<compile_context>
chip_gen: v7x
topology: tpu7x:2x2x1
jax: 0.10.0
libtpu: 0.0.40
codegen_flags: <defaults>
</compile_context>

<pallas_src>
import functools
import math

import numpy as np
import jax
import jax.numpy as jnp
from jax import lax
from jax.experimental import pallas as pl
from jax.experimental.pallas import tpu as pltpu

PAD = 0  # Constants.PAD


# ----------------------------------------------------------------------------
# sinusoid position table (identical math to the PyTorch helper)
# ----------------------------------------------------------------------------
def get_sinusoid_encoding_table(n_position, d_hid, padding_idx=None):
    pos = np.arange(n_position, dtype=np.float64)[:, None]
    hid = np.arange(d_hid, dtype=np.float64)[None, :]
    table = pos / np.power(10000.0, 2.0 * (np.floor(hid / 2.0)) / d_hid)
    table[:, 0::2] = np.sin(table[:, 0::2])
    table[:, 1::2] = np.cos(table[:, 1::2])
    if padding_idx is not None:
        table[padding_idx] = 0.0
    return jnp.asarray(table, dtype=jnp.float32)


# ----------------------------------------------------------------------------
# in-kernel helpers (f32 element-wise math)
# ----------------------------------------------------------------------------
def _layer_norm(x, g, b, eps=1e-5):
    mu = jnp.mean(x, axis=-1, keepdims=True)
    var = jnp.mean((x - mu) ** 2, axis=-1, keepdims=True)
    return (x - mu) * lax.rsqrt(var + eps) * g + b


# ----------------------------------------------------------------------------
# fused encoder kernel: grid = (batch, layer); activation carried in VMEM scratch
# ----------------------------------------------------------------------------
def encoder_kernel(x_ref, mk_ref,
                   wqkv_ref, bqkv_ref, wo_ref, bo_ref, ln1g_ref, ln1b_ref,
                   w1_ref, b1_ref, w2_ref, b2_ref, ln2g_ref, ln2b_ref,
                   o_ref,
                   x_sc, *, n_layers, n_head, d_k, kernel_size):
    l = pl.program_id(1)

    @pl.when(l == 0)
    def _init():
        x_sc[...] = x_ref[0]                        # fresh batch element

    x = x_sc[...]                                   # (T, D) f32 activation carry
    key_mask = mk_ref[0]                            # (1, T) f32: 1.0 where key is PAD
    T, D = x.shape
    H, dk, K = n_head, d_k, kernel_size
    d_inner = w1_ref.shape[-1]
    pad = (K - 1) // 2
    scale = 1.0 / math.sqrt(dk)
    bf16 = jnp.bfloat16

    # Additive attention bias (masked_fill(-inf) stand-in; fully-PAD rows give a
    # uniform softmax instead of NaN, then get zeroed below).
    attn_bias = key_mask * 1e9

    # Per-query keep mask (T, 1): query PAD mask equals key PAD mask for this
    # self-attention encoder.  Diag-select + lane reduce (no [T,1] DMA stream).
    rows = lax.broadcasted_iota(jnp.int32, (T, T), 0)
    cols = lax.broadcasted_iota(jnp.int32, (T, T), 1)
    eye = (rows == cols).astype(jnp.float32)
    keep_rows = jnp.sum(eye * (1.0 - key_mask), axis=1, keepdims=True)   # (T, 1)

    # ---------------- multi-head self attention ----------------
    # Fused QKV projection: one wide bf16 matmul, f32 accumulation + bias.
    qkv = jnp.dot(x.astype(bf16), wqkv_ref[0],
                  preferred_element_type=jnp.float32) + bqkv_ref[0]      # (T, 3*H*dk)
    qkv_bf = qkv.astype(bf16)

    ctx_heads = []
    for h in range(H):
        qh = qkv_bf[:, h * dk:(h + 1) * dk]
        kh = qkv_bf[:, (H + h) * dk:(H + h + 1) * dk]
        vh = qkv_bf[:, (2 * H + h) * dk:(2 * H + h + 1) * dk]
        s = lax.dot_general(qh, kh, (((1,), (1,)), ((), ())),
                            preferred_element_type=jnp.float32) * scale
        s = s - attn_bias
        s = s - jnp.max(s, axis=-1, keepdims=True)
        e = jnp.exp(s)
        attn = e * pl.reciprocal(jnp.sum(e, axis=-1, keepdims=True), approx=True)
        ctx_heads.append(jnp.dot(attn.astype(bf16), vh,
                                 preferred_element_type=jnp.float32))
    ctx = ctx_heads[0] if H == 1 else jnp.concatenate(ctx_heads, axis=-1)  # (T, H*dk)

    # Single wide output projection (head concat folded into one matmul).
    attn_out = jnp.dot(ctx.astype(bf16), wo_ref[0],
                       preferred_element_type=jnp.float32) + bo_ref[0]

    y = _layer_norm(attn_out + x, ln1g_ref[0], ln1b_ref[0])
    y = y * keep_rows                               # masked_fill(mask.unsqueeze(-1), 0)

    # ---------------- position-wise Conv1d feed-forward ----------------
    # Zero-pad once (sublane concat), then each tap is a cheap static sublane
    # window feeding a bf16 matmul — no TxT shift matrices, no MXU data movement.
    if pad > 0:
        zD = jnp.zeros((pad, D), jnp.float32)
        ywide = jnp.concatenate([zD, y, zD], axis=0)           # (T + 2*pad, D)
    else:
        ywide = y
    h1 = jnp.dot(ywide[0:T, :].astype(bf16), w1_ref[0, 0],
                 preferred_element_type=jnp.float32)
    for kk in range(1, K):
        h1 = h1 + jnp.dot(ywide[kk:kk + T, :].astype(bf16), w1_ref[0, kk],
                          preferred_element_type=jnp.float32)
    h1 = jnp.maximum(h1 + b1_ref[0], 0.0)                       # bias once, then ReLU

    if pad > 0:
        zI = jnp.zeros((pad, d_inner), jnp.float32)
        hwide = jnp.concatenate([zI, h1, zI], axis=0)           # (T + 2*pad, d_inner)
    else:
        hwide = h1
    h2 = jnp.dot(hwide[0:T, :].astype(bf16), w2_ref[0, 0],
                 preferred_element_type=jnp.float32)
    for kk in range(1, K):
        h2 = h2 + jnp.dot(hwide[kk:kk + T, :].astype(bf16), w2_ref[0, kk],
                          preferred_element_type=jnp.float32)
    h2 = h2 + b2_ref[0]

    z = _layer_norm(h2 + y, ln2g_ref[0], ln2b_ref[0])
    x_new = z * keep_rows                           # masked_fill(mask.unsqueeze(-1), 0)

    x_sc[...] = x_new                               # carry to next layer

    @pl.when(l == n_layers - 1)
    def _finalize():
        o_ref[0] = x_new


# ----------------------------------------------------------------------------
# Encoder forward (embedding + positional enc in JAX, all FFT blocks in Pallas)
# ----------------------------------------------------------------------------
def encoder_forward(src_seq, style_vector, face_vector, mask, params, *,
                    n_head, d_k, kernel_size, max_seq_len=None):
    del style_vector, face_vector  # unused on the style_FFT=False path
    B, T = src_seq.shape
    D = params["emb"].shape[-1]

    emb = jnp.take(params["emb"], src_seq, axis=0)             # [B, T, D]
    if max_seq_len is not None and T > max_seq_len:
        pos = get_sinusoid_encoding_table(T, D)[None, :T, :]   # inference long-seq path
    else:
        pos = params["pos"][None, :T, :]
    x = (emb + pos).astype(jnp.float32)
    mask_k = mask.astype(jnp.float32)[:, None, :]              # [B, 1, T]

    layers = params["layers"]
    L, H, K = len(layers), n_head, kernel_size
    d_inner = layers[0]["w1"].shape[-1]
    bf16 = jnp.bfloat16

    def stack(name):
        return jnp.stack([lp[name] for lp in layers], axis=0)

    # Streamed per-layer weight slabs (bf16 for MXU operands, f32 for the rest).
    wqkv = jnp.concatenate([stack("wq"), stack("wk"), stack("wv")],
                           axis=-1).astype(bf16)               # [L, D, 3*H*dk]
    bqkv = jnp.concatenate([stack("bq"), stack("bk"), stack("bv")],
                           axis=-1).astype(jnp.float32)        # [L, 1, 3*H*dk]
    wo = stack("wo").astype(bf16)                              # [L, H*dk, D]
    bo = stack("bo")                                           # [L, 1, D]
    ln1g, ln1b = stack("ln1_g"), stack("ln1_b")
    w1 = stack("w1").astype(bf16)                              # [L, K, D, d_inner]
    b1 = stack("b1")                                           # [L, 1, d_inner]
    w2 = stack("w2").astype(bf16)                              # [L, K, d_inner, D]
    b2 = stack("b2")                                           # [L, 1, D]
    ln2g, ln2b = stack("ln2_g"), stack("ln2_b")

    weights = [wqkv, bqkv, wo, bo, ln1g, ln1b, w1, b1, w2, b2, ln2g, ln2b]

    def layer_spec(arr):
        nd = arr.ndim
        block = (1,) + tuple(arr.shape[1:])
        return pl.BlockSpec(block, lambda b, l, _nd=nd: (l,) + (0,) * (_nd - 1))

    kernel = functools.partial(encoder_kernel, n_layers=L, n_head=H,
                               d_k=d_k, kernel_size=K)

    # ---- cost estimate (weights streamed once per (batch, layer) step) ----
    per_layer_flops = (
        2 * T * D * (3 * H * d_k)                 # fused qkv projection
        + H * (2 * 2 * T * T * d_k)               # scores + attn @ v
        + 2 * T * (H * d_k) * D                   # output projection
        + K * 2 * T * D * d_inner                 # conv 1
        + K * 2 * T * d_inner * D)                # conv 2
    weight_bytes_per_layer = sum(
        int(np.prod(w.shape[1:])) * w.dtype.itemsize for w in weights)
    cost = pl.CostEstimate(
        flops=int(B * L * per_layer_flops),
        transcendentals=int(B * L * H * T * T),
        bytes_accessed=int(B * L * weight_bytes_per_layer
                           + 4 * (2 * B * T * D + B * T)))

    # ---- per-grid-step working set -> explicit scoped-VMEM budget ----
    block_bytes = 4 * (2 * 2 * T * D + 2 * T)         # in/out blocks (double-buffered) + mask
    scratch_bytes = 4 * T * D                         # activation carry
    transient_bytes = 4 * (T * 3 * H * d_k + T * T + 2 * T * d_inner
                           + 6 * T * D + 2 * T * T)   # qkv, scores, conv tmps, eye
    vmem_limit = int(2 * weight_bytes_per_layer       # double-buffered layer weights
                     + block_bytes + scratch_bytes
                     + 2 * transient_bytes + (8 << 20))
    vmem_limit = max(32 << 20, min(vmem_limit, 64 << 20))   # stay within v7x physical VMEM

    return pl.pallas_call(
        kernel,
        out_shape=jax.ShapeDtypeStruct((B, T, D), jnp.float32),
        grid_spec=pltpu.PrefetchScalarGridSpec(
            num_scalar_prefetch=0,
            grid=(B, L),
            in_specs=[
                pl.BlockSpec((1, T, D), lambda b, l: (b, 0, 0)),   # activations
                pl.BlockSpec((1, 1, T), lambda b, l: (b, 0, 0)),   # key mask (lane-dense)
            ] + [layer_spec(w) for w in weights],
            out_specs=pl.BlockSpec((1, T, D), lambda b, l: (b, 0, 0)),
            scratch_shapes=[pltpu.VMEM((T, D), jnp.float32)],      # cross-layer carry
        ),
        compiler_params=pltpu.CompilerParams(
            dimension_semantics=("parallel", "arbitrary"),   # batch -> both TCs on v7x
            vmem_limit_bytes=vmem_limit),
        cost_estimate=cost,
    )(x, mask_k, *weights)


def init_encoder_params(key, *, n_src_vocab, d_model, n_layers, n_head,
                        d_inner, kernel_size, max_seq_len):
    d_k = d_model // n_head
    keys = jax.random.split(key, 2 + n_layers)

    emb = 0.02 * jax.random.normal(keys[0], (n_src_vocab, d_model), jnp.float32)
    emb = emb.at[PAD].set(0.0)                            # padding_idx=PAD
    pos = get_sinusoid_encoding_table(max_seq_len + 1, d_model)

    layers = []
    for li in range(n_layers):
        lk = jax.random.split(keys[2 + li], 12)
        s = 0.02
        layers.append(dict(
            wq=s * jax.random.normal(lk[0], (d_model, n_head * d_k), jnp.float32),
            bq=s * jax.random.normal(lk[1], (1, n_head * d_k), jnp.float32),
            wk=s * jax.random.normal(lk[2], (d_model, n_head * d_k), jnp.float32),
            bk=s * jax.random.normal(lk[3], (1, n_head * d_k), jnp.float32),
            wv=s * jax.random.normal(lk[4], (d_model, n_head * d_k), jnp.float32),
            bv=s * jax.random.normal(lk[5], (1, n_head * d_k), jnp.float32),
            wo=s * jax.random.normal(lk[6], (n_head * d_k, d_model), jnp.float32),
            bo=s * jax.random.normal(lk[7], (1, d_model), jnp.float32),
            ln1_g=jnp.ones((1, d_model), jnp.float32),
            ln1_b=jnp.zeros((1, d_model), jnp.float32),
            # Conv1d weights pre-transposed: [K, C_in, C_out]
            w1=s * jax.random.normal(lk[8], (kernel_size, d_model, d_inner), jnp.float32),
            b1=s * jax.random.normal(lk[9], (1, d_inner), jnp.float32),
            w2=s * jax.random.normal(lk[10], (kernel_size, d_inner, d_model), jnp.float32),
            b2=s * jax.random.normal(lk[11], (1, d_model), jnp.float32),
            ln2_g=jnp.ones((1, d_model), jnp.float32),
            ln2_b=jnp.zeros((1, d_model), jnp.float32),
        ))
    return dict(emb=emb, pos=pos, layers=layers)


if __name__ == "__main__":
    # synthetic config (small; production shapes should use D, d_inner multiples of 128)
    B, T = 2, 16
    d_model, n_head, n_layers = 32, 2, 2
    d_k = d_model // n_head
    d_inner = 64
    kernel_size = 3
    max_seq_len = 16
    n_src_vocab = 40          # len(symbols) + 1
    style_dim = 32

    root = jax.random.PRNGKey(0)
    k_params, k_seq, k_style, k_face = jax.random.split(root, 4)

    params = init_encoder_params(
        k_params, n_src_vocab=n_src_vocab, d_model=d_model, n_layers=n_layers,
        n_head=n_head, d_inner=d_inner, kernel_size=kernel_size,
        max_seq_len=max_seq_len)

    src_seq = jax.random.randint(k_seq, (B, T), 1, n_src_vocab, dtype=jnp.int32)
    src_seq = src_seq.at[1, 12:].set(PAD)                 # padded tail in batch 1
    mask = (src_seq == PAD)                               # True = PAD, like PyTorch
    style_vector = jax.random.normal(k_style, (B, style_dim), jnp.float32)
    face_vector = jax.random.normal(k_face, (B, style_dim), jnp.float32)

    out = encoder_forward(src_seq, style_vector, face_vector, mask, params,
                          n_head=n_head, d_k=d_k, kernel_size=kernel_size,
                          max_seq_len=max_seq_len)
    jax.block_until_ready(out)
    assert out.shape == (B, T, d_model) and out.dtype == jnp.float32
    print("KERNEL_OK")
</pallas_src>

<mosaic_0001>
module attributes {stable_mosaic.version = 11 : i64} {
  func.func @encoder_kernel(%arg0: i32, %arg1: i32, %arg2: memref<1x16x32xf32, #tpu.memory_space<vmem>>, %arg3: memref<1x1x16xf32, #tpu.memory_space<vmem>>, %arg4: memref<1x32x96xbf16, #tpu.memory_space<vmem>>, %arg5: memref<1x1x96xf32, #tpu.memory_space<vmem>>, %arg6: memref<1x32x32xbf16, #tpu.memory_space<vmem>>, %arg7: memref<1x1x32xf32, #tpu.memory_space<vmem>>, %arg8: memref<1x1x32xf32, #tpu.memory_space<vmem>>, %arg9: memref<1x1x32xf32, #tpu.memory_space<vmem>>, %arg10: memref<1x3x32x64xbf16, #tpu.memory_space<vmem>>, %arg11: memref<1x1x64xf32, #tpu.memory_space<vmem>>, %arg12: memref<1x3x64x32xbf16, #tpu.memory_space<vmem>>, %arg13: memref<1x1x32xf32, #tpu.memory_space<vmem>>, %arg14: memref<1x1x32xf32, #tpu.memory_space<vmem>>, %arg15: memref<1x1x32xf32, #tpu.memory_space<vmem>>, %arg16: memref<1x16x32xf32, #tpu.memory_space<vmem>>, %arg17: memref<16x32xf32, #tpu.memory_space<vmem>>) attributes {dimension_semantics = [#tpu.dimension_semantics<parallel>, #tpu.dimension_semantics<arbitrary>], iteration_bounds = array<i64: 2, 2>, scalar_prefetch = 0 : i64, scratch_operands = 1 : i64, tpu.core_type = #tpu.core_type<tc>, window_params = [{transform_indices = @transform_0, window_bounds = array<i64: 1, 16, 32>}, {transform_indices = @transform_1, window_bounds = array<i64: 1, 1, 16>}, {transform_indices = @transform_2, window_bounds = array<i64: 1, 32, 96>}, {transform_indices = @transform_3, window_bounds = array<i64: 1, 1, 96>}, {transform_indices = @transform_4, window_bounds = array<i64: 1, 32, 32>}, {transform_indices = @transform_5, window_bounds = array<i64: 1, 1, 32>}, {transform_indices = @transform_6, window_bounds = array<i64: 1, 1, 32>}, {transform_indices = @transform_7, window_bounds = array<i64: 1, 1, 32>}, {transform_indices = @transform_8, window_bounds = array<i64: 1, 3, 32, 64>}, {transform_indices = @transform_9, window_bounds = array<i64: 1, 1, 64>}, {transform_indices = @transform_10, window_bounds = array<i64: 1, 3, 64, 32>}, {transform_indices = @transform_11, window_bounds = array<i64: 1, 1, 32>}, {transform_indices = @transform_12, window_bounds = array<i64: 1, 1, 32>}, {transform_indices = @transform_13, window_bounds = array<i64: 1, 1, 32>}, {transform_indices = @transform_14, window_bounds = array<i64: 1, 16, 32>}]} {
    %c0_i32 = arith.constant 0 : i32
    %0 = arith.cmpi eq, %arg1, %c0_i32 : i32
    %1 = arith.extui %0 : i1 to i32
    %c0_i32_0 = arith.constant 0 : i32
    %2 = arith.cmpi ne, %1, %c0_i32_0 : i32
    scf.if %2 {
      %c0_93 = arith.constant 0 : index
      %c0_94 = arith.constant 0 : index
      %c0_95 = arith.constant 0 : index
      %187 = vector.load %arg2[%c0_93, %c0_94, %c0_95] : memref<1x16x32xf32, #tpu.memory_space<vmem>>, vector<1x16x32xf32>
      %188 = vector.shape_cast %187 : vector<1x16x32xf32> to vector<16x32xf32>
      %c0_96 = arith.constant 0 : index
      %c0_97 = arith.constant 0 : index
      %189 = vector.load %arg17[%c0_96, %c0_97] : memref<16x32xf32, #tpu.memory_space<vmem>>, vector<16x32xf32>
      tpu.vector_store %arg17[%c0_96, %c0_97], %188 {strides = array<i32>} : memref<16x32xf32, #tpu.memory_space<vmem>>, vector<16x32xf32>,
    } else {
    }
    %c0 = arith.constant 0 : index
    %c0_1 = arith.constant 0 : index
    %3 = vector.load %arg17[%c0, %c0_1] : memref<16x32xf32, #tpu.memory_space<vmem>>, vector<16x32xf32>
    %c0_2 = arith.constant 0 : index
    %c0_3 = arith.constant 0 : index
    %c0_4 = arith.constant 0 : index
    %4 = vector.load %arg3[%c0_2, %c0_3, %c0_4] : memref<1x1x16xf32, #tpu.memory_space<vmem>>, vector<1x1x16xf32>
    %5 = vector.shape_cast %4 : vector<1x1x16xf32> to vector<1x16xf32>
    %cst = arith.constant 1.000000e+09 : f32
    %6 = vector.broadcast %cst : f32 to vector<1x16xf32>
    %7 = arith.mulf %5, %6 : vector<1x16xf32>
    %8 = tpu.iota {dimensions = array<i32: 0>} : vector<16x16xi32>
    %9 = tpu.iota {dimensions = array<i32: 1>} : vector<16x16xi32>
    %10 = arith.cmpi eq, %8, %9 : vector<16x16xi32>
    %11 = arith.extui %10 : vector<16x16xi1> to vector<16x16xi32>
    %12 = arith.sitofp %11 : vector<16x16xi32> to vector<16x16xf32>
    %cst_5 = arith.constant 1.000000e+00 : f32
    %13 = vector.broadcast %cst_5 : f32 to vector<1x16xf32>
    %14 = arith.subf %13, %5 : vector<1x16xf32>
    %15 = vector.broadcast %14 : vector<1x16xf32> to vector<16x16xf32>
    %16 = arith.mulf %12, %15 : vector<16x16xf32>
    %cst_6 = arith.constant dense<0.000000e+00> : vector<16xf32>
    %17 = vector.multi_reduction <add>, %16, %cst_6 [1] : vector<16x16xf32> to vector<16xf32>
    %18 = vector.shape_cast %17 : vector<16xf32> to vector<16x1xf32>
    %19 = arith.truncf %3 : vector<16x32xf32> to vector<16x32xbf16>
    %c0_7 = arith.constant 0 : index
    %c0_8 = arith.constant 0 : index
    %c0_9 = arith.constant 0 : index
    %20 = vector.load %arg4[%c0_7, %c0_8, %c0_9] : memref<1x32x96xbf16, #tpu.memory_space<vmem>>, vector<1x32x96xbf16>
    %21 = vector.shape_cast %20 : vector<1x32x96xbf16> to vector<32x96xbf16>
    %cst_10 = arith.constant dense<0.000000e+00> : vector<16x96xf32>
    %22 = tpu.matmul %19, %21, %cst_10 {dimension_numbers = #tpu.dot_dimension_numbers<[1], [0], [0], [1], [0, 0, 1, 1], [], []>} : vector<16x32xbf16>, vector<32x96xbf16>, vector<16x96xf32> -> vector<16x96xf32>
    %c0_11 = arith.constant 0 : index
    %c0_12 = arith.constant 0 : index
    %c0_13 = arith.constant 0 : index
    %23 = vector.load %arg5[%c0_11, %c0_12, %c0_13] : memref<1x1x96xf32, #tpu.memory_space<vmem>>, vector<1x1x96xf32>
    %24 = vector.shape_cast %23 : vector<1x1x96xf32> to vector<1x96xf32>
    %25 = vector.broadcast %24 : vector<1x96xf32> to vector<16x96xf32>
    %26 = arith.addf %22, %25 : vector<16x96xf32>
    %27 = arith.truncf %26 : vector<16x96xf32> to vector<16x96xbf16>
    %28 = vector.extract_strided_slice %27 {offsets = [0, 0], sizes = [16, 16], strides = [1, 1]} : vector<16x96xbf16> to vector<16x16xbf16>
    %29 = vector.extract_strided_slice %27 {offsets = [0, 32], sizes = [16, 16], strides = [1, 1]} : vector<16x96xbf16> to vector<16x16xbf16>
    %30 = vector.extract_strided_slice %27 {offsets = [0, 64], sizes = [16, 16], strides = [1, 1]} : vector<16x96xbf16> to vector<16x16xbf16>
    %cst_14 = arith.constant dense<0.000000e+00> : vector<16x16xf32>
    %31 = tpu.matmul %28, %29, %cst_14 {dimension_numbers = #tpu.dot_dimension_numbers<[1], [1], [0], [0], [0, 0, 1, 0], [], []>} : vector<16x16xbf16>, vector<16x16xbf16>, vector<16x16xf32> -> vector<16x16xf32>
    %cst_15 = arith.constant 2.500000e-01 : f32
    %32 = vector.broadcast %cst_15 : f32 to vector<16x16xf32>
    %33 = arith.mulf %31, %32 : vector<16x16xf32>
    %34 = vector.broadcast %7 : vector<1x16xf32> to vector<16x16xf32>
    %35 = arith.subf %33, %34 : vector<16x16xf32>
    %cst_16 = arith.constant dense<0xFF800000> : vector<16xf32>
    %36 = vector.multi_reduction <maximumf>, %35, %cst_16 [1] : vector<16x16xf32> to vector<16xf32>
    %37 = vector.shape_cast %36 : vector<16xf32> to vector<16x1xf32>
    %38 = vector.broadcast %37 : vector<16x1xf32> to vector<16x16xf32>
    %39 = arith.subf %35, %38 : vector<16x16xf32>
    %40 = math.exp %39 : vector<16x16xf32>
    %cst_17 = arith.constant dense<0.000000e+00> : vector<16xf32>
    %41 = vector.multi_reduction <add>, %40, %cst_17 [1] : vector<16x16xf32> to vector<16xf32>
    %42 = vector.shape_cast %41 : vector<16xf32> to vector<16x1xf32>
    %43 = tpu.reciprocal %42 {approx = true} : vector<16x1xf32> -> vector<16x1xf32>
    %44 = vector.broadcast %43 : vector<16x1xf32> to vector<16x16xf32>
    %45 = arith.mulf %40, %44 : vector<16x16xf32>
    %46 = arith.truncf %45 : vector<16x16xf32> to vector<16x16xbf16>
    %cst_18 = arith.constant dense<0.000000e+00> : vector<16x16xf32>
    %47 = tpu.matmul %46, %30, %cst_18 {dimension_numbers = #tpu.dot_dimension_numbers<[1], [0], [0], [1], [0, 0, 1, 1], [], []>} : vector<16x16xbf16>, vector<16x16xbf16>, vector<16x16xf32> -> vector<16x16xf32>
    %48 = vector.extract_strided_slice %27 {offsets = [0, 16], sizes = [16, 16], strides = [1, 1]} : vector<16x96xbf16> to vector<16x16xbf16>
    %49 = vector.extract_strided_slice %27 {offsets = [0, 48], sizes = [16, 16], strides = [1, 1]} : vector<16x96xbf16> to vector<16x16xbf16>
    %50 = vector.extract_strided_slice %27 {offsets = [0, 80], sizes = [16, 16], strides = [1, 1]} : vector<16x96xbf16> to vector<16x16xbf16>
    %cst_19 = arith.constant dense<0.000000e+00> : vector<16x16xf32>
    %51 = tpu.matmul %48, %49, %cst_19 {dimension_numbers = #tpu.dot_dimension_numbers<[1], [1], [0], [0], [0, 0, 1, 0], [], []>} : vector<16x16xbf16>, vector<16x16xbf16>, vector<16x16xf32> -> vector<16x16xf32>
    %cst_20 = arith.constant 2.500000e-01 : f32
    %52 = vector.broadcast %cst_20 : f32 to vector<16x16xf32>
    %53 = arith.mulf %51, %52 : vector<16x16xf32>
    %54 = vector.broadcast %7 : vector<1x16xf32> to vector<16x16xf32>
    %55 = arith.subf %53, %54 : vector<16x16xf32>
    %cst_21 = arith.constant dense<0xFF800000> : vector<16xf32>
    %56 = vector.multi_reduction <maximumf>, %55, %cst_21 [1] : vector<16x16xf32> to vector<16xf32>
    %57 = vector.shape_cast %56 : vector<16xf32> to vector<16x1xf32>
    %58 = vector.broadcast %57 : vector<16x1xf32> to vector<16x16xf32>
    %59 = arith.subf %55, %58 : vector<16x16xf32>
    %60 = math.exp %59 : vector<16x16xf32>
    %cst_22 = arith.constant dense<0.000000e+00> : vector<16xf32>
    %61 = vector.multi_reduction <add>, %60, %cst_22 [1] : vector<16x16xf32> to vector<16xf32>
    %62 = vector.shape_cast %61 : vector<16xf32> to vector<16x1xf32>
    %63 = tpu.reciprocal %62 {approx = true} : vector<16x1xf32> -> vector<16x1xf32>
    %64 = vector.broadcast %63 : vector<16x1xf32> to vector<16x16xf32>
    %65 = arith.mulf %60, %64 : vector<16x16xf32>
    %66 = arith.truncf %65 : vector<16x16xf32> to vector<16x16xbf16>
    %cst_23 = arith.constant dense<0.000000e+00> : vector<16x16xf32>
    %67 = tpu.matmul %66, %50, %cst_23 {dimension_numbers = #tpu.dot_dimension_numbers<[1], [0], [0], [1], [0, 0, 1, 1], [], []>} : vector<16x16xbf16>, vector<16x16xbf16>, vector<16x16xf32> -> vector<16x16xf32>
    %68 = tpu.concatenate %47, %67 in 1 : vector<16x16xf32>, vector<16x16xf32> -> vector<16x32xf32>
    %69 = arith.truncf %68 : vector<16x32xf32> to vector<16x32xbf16>
    %c0_24 = arith.constant 0 : index
    %c0_25 = arith.constant 0 : index
    %c0_26 = arith.constant 0 : index
    %70 = vector.load %arg6[%c0_24, %c0_25, %c0_26] : memref<1x32x32xbf16, #tpu.memory_space<vmem>>, vector<1x32x32xbf16>
    %71 = vector.shape_cast %70 : vector<1x32x32xbf16> to vector<32x32xbf16>
    %cst_27 = arith.constant dense<0.000000e+00> : vector<16x32xf32>
    %72 = tpu.matmul %69, %71, %cst_27 {dimension_numbers = #tpu.dot_dimension_numbers<[1], [0], [0], [1], [0, 0, 1, 1], [], []>} : vector<16x32xbf16>, vector<32x32xbf16>, vector<16x32xf32> -> vector<16x32xf32>
    %c0_28 = arith.constant 0 : index
    %c0_29 = arith.constant 0 : index
    %c0_30 = arith.constant 0 : index
    %73 = vector.load %arg7[%c0_28, %c0_29, %c0_30] : memref<1x1x32xf32, #tpu.memory_space<vmem>>, vector<1x1x32xf32>
    %74 = vector.shape_cast %73 : vector<1x1x32xf32> to vector<1x32xf32>
    %75 = vector.broadcast %74 : vector<1x32xf32> to vector<16x32xf32>
    %76 = arith.addf %72, %75 : vector<16x32xf32>
    %77 = arith.addf %76, %3 : vector<16x32xf32>
    %c0_31 = arith.constant 0 : index
    %c0_32 = arith.constant 0 : index
    %c0_33 = arith.constant 0 : index
    %78 = vector.load %arg8[%c0_31, %c0_32, %c0_33] : memref<1x1x32xf32, #tpu.memory_space<vmem>>, vector<1x1x32xf32>
    %79 = vector.shape_cast %78 : vector<1x1x32xf32> to vector<1x32xf32>
    %c0_34 = arith.constant 0 : index
    %c0_35 = arith.constant 0 : index
    %c0_36 = arith.constant 0 : index
    %80 = vector.load %arg9[%c0_34, %c0_35, %c0_36] : memref<1x1x32xf32, #tpu.memory_space<vmem>>, vector<1x1x32xf32>
    %81 = vector.shape_cast %80 : vector<1x1x32xf32> to vector<1x32xf32>
    %cst_37 = arith.constant dense<0.000000e+00> : vector<16xf32>
    %82 = vector.multi_reduction <add>, %77, %cst_37 [1] : vector<16x32xf32> to vector<16xf32>
    %83 = vector.shape_cast %82 : vector<16xf32> to vector<16x1xf32>
    %cst_38 = arith.constant 3.200000e+01 : f32
    %84 = vector.broadcast %cst_38 : f32 to vector<16x1xf32>
    %85 = arith.divf %83, %84 : vector<16x1xf32>
    %86 = vector.broadcast %85 : vector<16x1xf32> to vector<16x32xf32>
    %87 = arith.subf %77, %86 : vector<16x32xf32>
    %88 = arith.mulf %87, %87 : vector<16x32xf32>
    %cst_39 = arith.constant dense<0.000000e+00> : vector<16xf32>
    %89 = vector.multi_reduction <add>, %88, %cst_39 [1] : vector<16x32xf32> to vector<16xf32>
    %90 = vector.shape_cast %89 : vector<16xf32> to vector<16x1xf32>
    %cst_40 = arith.constant 3.200000e+01 : f32
    %91 = vector.broadcast %cst_40 : f32 to vector<16x1xf32>
    %92 = arith.divf %90, %91 : vector<16x1xf32>
    %93 = vector.broadcast %85 : vector<16x1xf32> to vector<16x32xf32>
    %94 = arith.subf %77, %93 : vector<16x32xf32>
    %cst_41 = arith.constant 9.99999974E-6 : f32
    %95 = vector.broadcast %cst_41 : f32 to vector<16x1xf32>
    %96 = arith.addf %92, %95 : vector<16x1xf32>
    %97 = math.rsqrt %96 : vector<16x1xf32>
    %98 = vector.broadcast %97 : vector<16x1xf32> to vector<16x32xf32>
    %99 = arith.mulf %94, %98 : vector<16x32xf32>
    %100 = vector.broadcast %79 : vector<1x32xf32> to vector<16x32xf32>
    %101 = arith.mulf %99, %100 : vector<16x32xf32>
    %102 = vector.broadcast %81 : vector<1x32xf32> to vector<16x32xf32>
    %103 = arith.addf %101, %102 : vector<16x32xf32>
    %104 = vector.broadcast %18 : vector<16x1xf32> to vector<16x32xf32>
    %105 = arith.mulf %103, %104 : vector<16x32xf32>
    %cst_42 = arith.constant 0.000000e+00 : f32
    %106 = vector.broadcast %cst_42 : f32 to vector<1x32xf32>
    %107 = tpu.concatenate %106, %105, %106 in 0 : vector<1x32xf32>, vector<16x32xf32>, vector<1x32xf32> -> vector<18x32xf32>
    %108 = vector.extract_strided_slice %107 {offsets = [0, 0], sizes = [16, 32], strides = [1, 1]} : vector<18x32xf32> to vector<16x32xf32>
    %109 = arith.truncf %108 : vector<16x32xf32> to vector<16x32xbf16>
    %c0_43 = arith.constant 0 : index
    %c0_44 = arith.constant 0 : index
    %c0_45 = arith.constant 0 : index
    %c0_46 = arith.constant 0 : index
    %110 = vector.load %arg10[%c0_43, %c0_44, %c0_45, %c0_46] : memref<1x3x32x64xbf16, #tpu.memory_space<vmem>>, vector<1x1x32x64xbf16>
    %111 = vector.shape_cast %110 : vector<1x1x32x64xbf16> to vector<32x64xbf16>
    %cst_47 = arith.constant dense<0.000000e+00> : vector<16x64xf32>
    %112 = tpu.matmul %109, %111, %cst_47 {dimension_numbers = #tpu.dot_dimension_numbers<[1], [0], [0], [1], [0, 0, 1, 1], [], []>} : vector<16x32xbf16>, vector<32x64xbf16>, vector<16x64xf32> -> vector<16x64xf32>
    %113 = vector.extract_strided_slice %107 {offsets = [1, 0], sizes = [16, 32], strides = [1, 1]} : vector<18x32xf32> to vector<16x32xf32>
    %114 = arith.truncf %113 : vector<16x32xf32> to vector<16x32xbf16>
    %c0_48 = arith.constant 0 : index
    %c1 = arith.constant 1 : index
    %c0_49 = arith.constant 0 : index
    %c0_50 = arith.constant 0 : index
    %115 = vector.load %arg10[%c0_48, %c1, %c0_49, %c0_50] : memref<1x3x32x64xbf16, #tpu.memory_space<vmem>>, vector<1x1x32x64xbf16>
    %116 = vector.shape_cast %115 : vector<1x1x32x64xbf16> to vector<32x64xbf16>
    %cst_51 = arith.constant dense<0.000000e+00> : vector<16x64xf32>
    %117 = tpu.matmul %114, %116, %cst_51 {dimension_numbers = #tpu.dot_dimension_numbers<[1], [0], [0], [1], [0, 0, 1, 1], [], []>} : vector<16x32xbf16>, vector<32x64xbf16>, vector<16x64xf32> -> vector<16x64xf32>
    %118 = arith.addf %112, %117 : vector<16x64xf32>
    %119 = vector.extract_strided_slice %107 {offsets = [2, 0], sizes = [16, 32], strides = [1, 1]} : vector<18x32xf32> to vector<16x32xf32>
    %120 = arith.truncf %119 : vector<16x32xf32> to vector<16x32xbf16>
    %c0_52 = arith.constant 0 : index
    %c2 = arith.constant 2 : index
    %c0_53 = arith.constant 0 : index
    %c0_54 = arith.constant 0 : index
    %121 = vector.load %arg10[%c0_52, %c2, %c0_53, %c0_54] : memref<1x3x32x64xbf16, #tpu.memory_space<vmem>>, vector<1x1x32x64xbf16>
    %122 = vector.shape_cast %121 : vector<1x1x32x64xbf16> to vector<32x64xbf16>
    %cst_55 = arith.constant dense<0.000000e+00> : vector<16x64xf32>
    %123 = tpu.matmul %120, %122, %cst_55 {dimension_numbers = #tpu.dot_dimension_numbers<[1], [0], [0], [1], [0, 0, 1, 1], [], []>} : vector<16x32xbf16>, vector<32x64xbf16>, vector<16x64xf32> -> vector<16x64xf32>
    %124 = arith.addf %118, %123 : vector<16x64xf32>
    %c0_56 = arith.constant 0 : index
    %c0_57 = arith.constant 0 : index
    %c0_58 = arith.constant 0 : index
    %125 = vector.load %arg11[%c0_56, %c0_57, %c0_58] : memref<1x1x64xf32, #tpu.memory_space<vmem>>, vector<1x1x64xf32>
    %126 = vector.shape_cast %125 : vector<1x1x64xf32> to vector<1x64xf32>
    %127 = vector.broadcast %126 : vector<1x64xf32> to vector<16x64xf32>
    %128 = arith.addf %124, %127 : vector<16x64xf32>
    %cst_59 = arith.constant 0.000000e+00 : f32
    %129 = vector.broadcast %cst_59 : f32 to vector<16x64xf32>
    %130 = arith.maximumf %128, %129 : vector<16x64xf32>
    %cst_60 = arith.constant 0.000000e+00 : f32
    %131 = vector.broadcast %cst_60 : f32 to vector<1x64xf32>
    %132 = tpu.concatenate %131, %130, %131 in 0 : vector<1x64xf32>, vector<16x64xf32>, vector<1x64xf32> -> vector<18x64xf32>
    %133 = vector.extract_strided_slice %132 {offsets = [0, 0], sizes = [16, 64], strides = [1, 1]} : vector<18x64xf32> to vector<16x64xf32>
    %134 = arith.truncf %133 : vector<16x64xf32> to vector<16x64xbf16>
    %c0_61 = arith.constant 0 : index
    %c0_62 = arith.constant 0 : index
    %c0_63 = arith.constant 0 : index
    %c0_64 = arith.constant 0 : index
    %135 = vector.load %arg12[%c0_61, %c0_62, %c0_63, %c0_64] : memref<1x3x64x32xbf16, #tpu.memory_space<vmem>>, vector<1x1x64x32xbf16>
    %136 = vector.shape_cast %135 : vector<1x1x64x32xbf16> to vector<64x32xbf16>
    %cst_65 = arith.constant dense<0.000000e+00> : vector<16x32xf32>
    %137 = tpu.matmul %134, %136, %cst_65 {dimension_numbers = #tpu.dot_dimension_numbers<[1], [0], [0], [1], [0, 0, 1, 1], [], []>} : vector<16x64xbf16>, vector<64x32xbf16>, vector<16x32xf32> -> vector<16x32xf32>
    %138 = vector.extract_strided_slice %132 {offsets = [1, 0], sizes = [16, 64], strides = [1, 1]} : vector<18x64xf32> to vector<16x64xf32>
    %139 = arith.truncf %138 : vector<16x64xf32> to vector<16x64xbf16>
    %c0_66 = arith.constant 0 : index
    %c1_67 = arith.constant 1 : index
    %c0_68 = arith.constant 0 : index
    %c0_69 = arith.constant 0 : index
    %140 = vector.load %arg12[%c0_66, %c1_67, %c0_68, %c0_69] : memref<1x3x64x32xbf16, #tpu.memory_space<vmem>>, vector<1x1x64x32xbf16>
    %141 = vector.shape_cast %140 : vector<1x1x64x32xbf16> to vector<64x32xbf16>
    %cst_70 = arith.constant dense<0.000000e+00> : vector<16x32xf32>
    %142 = tpu.matmul %139, %141, %cst_70 {dimension_numbers = #tpu.dot_dimension_numbers<[1], [0], [0], [1], [0, 0, 1, 1], [], []>} : vector<16x64xbf16>, vector<64x32xbf16>, vector<16x32xf32> -> vector<16x32xf32>
    %143 = arith.addf %137, %142 : vector<16x32xf32>
    %144 = vector.extract_strided_slice %132 {offsets = [2, 0], sizes = [16, 64], strides = [1, 1]} : vector<18x64xf32> to vector<16x64xf32>
    %145 = arith.truncf %144 : vector<16x64xf32> to vector<16x64xbf16>
    %c0_71 = arith.constant 0 : index
    %c2_72 = arith.constant 2 : index
    %c0_73 = arith.constant 0 : index
    %c0_74 = arith.constant 0 : index
    %146 = vector.load %arg12[%c0_71, %c2_72, %c0_73, %c0_74] : memref<1x3x64x32xbf16, #tpu.memory_space<vmem>>, vector<1x1x64x32xbf16>
    %147 = vector.shape_cast %146 : vector<1x1x64x32xbf16> to vector<64x32xbf16>
    %cst_75 = arith.constant dense<0.000000e+00> : vector<16x32xf32>
    %148 = tpu.matmul %145, %147, %cst_75 {dimension_numbers = #tpu.dot_dimension_numbers<[1], [0], [0], [1], [0, 0, 1, 1], [], []>} : vector<16x64xbf16>, vector<64x32xbf16>, vector<16x32xf32> -> vector<16x32xf32>
    %149 = arith.addf %143, %148 : vector<16x32xf32>
    %c0_76 = arith.constant 0 : index
    %c0_77 = arith.constant 0 : index
    %c0_78 = arith.constant 0 : index
    %150 = vector.load %arg13[%c0_76, %c0_77, %c0_78] : memref<1x1x32xf32, #tpu.memory_space<vmem>>, vector<1x1x32xf32>
    %151 = vector.shape_cast %150 : vector<1x1x32xf32> to vector<1x32xf32>
    %152 = vector.broadcast %151 : vector<1x32xf32> to vector<16x32xf32>
    %153 = arith.addf %149, %152 : vector<16x32xf32>
    %154 = arith.addf %153, %105 : vector<16x32xf32>
    %c0_79 = arith.constant 0 : index
    %c0_80 = arith.constant 0 : index
    %c0_81 = arith.constant 0 : index
    %155 = vector.load %arg14[%c0_79, %c0_80, %c0_81] : memref<1x1x32xf32, #tpu.memory_space<vmem>>, vector<1x1x32xf32>
    %156 = vector.shape_cast %155 : vector<1x1x32xf32> to vector<1x32xf32>
    %c0_82 = arith.constant 0 : index
    %c0_83 = arith.constant 0 : index
    %c0_84 = arith.constant 0 : index
    %157 = vector.load %arg15[%c0_82, %c0_83, %c0_84] : memref<1x1x32xf32, #tpu.memory_space<vmem>>, vector<1x1x32xf32>
    %158 = vector.shape_cast %157 : vector<1x1x32xf32> to vector<1x32xf32>
    %cst_85 = arith.constant dense<0.000000e+00> : vector<16xf32>
    %159 = vector.multi_reduction <add>, %154, %cst_85 [1] : vector<16x32xf32> to vector<16xf32>
    %160 = vector.shape_cast %159 : vector<16xf32> to vector<16x1xf32>
    %cst_86 = arith.constant 3.200000e+01 : f32
    %161 = vector.broadcast %cst_86 : f32 to vector<16x1xf32>
    %162 = arith.divf %160, %161 : vector<16x1xf32>
    %163 = vector.broadcast %162 : vector<16x1xf32> to vector<16x32xf32>
    %164 = arith.subf %154, %163 : vector<16x32xf32>
    %165 = arith.mulf %164, %164 : vector<16x32xf32>
    %cst_87 = arith.constant dense<0.000000e+00> : vector<16xf32>
    %166 = vector.multi_reduction <add>, %165, %cst_87 [1] : vector<16x32xf32> to vector<16xf32>
    %167 = vector.shape_cast %166 : vector<16xf32> to vector<16x1xf32>
    %cst_88 = arith.constant 3.200000e+01 : f32
    %168 = vector.broadcast %cst_88 : f32 to vector<16x1xf32>
    %169 = arith.divf %167, %168 : vector<16x1xf32>
    %170 = vector.broadcast %162 : vector<16x1xf32> to vector<16x32xf32>
    %171 = arith.subf %154, %170 : vector<16x32xf32>
    %cst_89 = arith.constant 9.99999974E-6 : f32
    %172 = vector.broadcast %cst_89 : f32 to vector<16x1xf32>
    %173 = arith.addf %169, %172 : vector<16x1xf32>
    %174 = math.rsqrt %173 : vector<16x1xf32>
    %175 = vector.broadcast %174 : vector<16x1xf32> to vector<16x32xf32>
    %176 = arith.mulf %171, %175 : vector<16x32xf32>
    %177 = vector.broadcast %156 : vector<1x32xf32> to vector<16x32xf32>
    %178 = arith.mulf %176, %177 : vector<16x32xf32>
    %179 = vector.broadcast %158 : vector<1x32xf32> to vector<16x32xf32>
    %180 = arith.addf %178, %179 : vector<16x32xf32>
    %181 = vector.broadcast %18 : vector<16x1xf32> to vector<16x32xf32>
    %182 = arith.mulf %180, %181 : vector<16x32xf32>
    %c0_90 = arith.constant 0 : index
    %c0_91 = arith.constant 0 : index
    %183 = vector.load %arg17[%c0_90, %c0_91] : memref<16x32xf32, #tpu.memory_space<vmem>>, vector<16x32xf32>
    tpu.vector_store %arg17[%c0_90, %c0_91], %182 {strides = array<i32>} : memref<16x32xf32, #tpu.memory_space<vmem>>, vector<16x32xf32>,
    %c1_i32 = arith.constant 1 : i32
    %184 = arith.cmpi eq, %arg1, %c1_i32 : i32
    %185 = arith.extui %184 : i1 to i32
    %c0_i32_92 = arith.constant 0 : i32
    %186 = arith.cmpi ne, %185, %c0_i32_92 : i32
    scf.if %186 {
      %c0_93 = arith.constant 0 : index
      %c0_94 = arith.constant 0 : index
      %c0_95 = arith.constant 0 : index
      %187 = vector.load %arg16[%c0_93, %c0_94, %c0_95] : memref<1x16x32xf32, #tpu.memory_space<vmem>>, vector<1x16x32xf32>
      %188 = vector.shape_cast %187 : vector<1x16x32xf32> to vector<16x32xf32>
      %189 = vector.shape_cast %182 : vector<16x32xf32> to vector<1x16x32xf32>
      tpu.vector_store %arg16[%c0_93, %c0_94, %c0_95], %189 {strides = array<i32>} : memref<1x16x32xf32, #tpu.memory_space<vmem>>, vector<1x16x32xf32>,
    } else {
    }
    return
  }
  func.func @transform_0(%arg0: i32, %arg1: i32) -> (i32, i32, i32) {
    %c0_i32 = arith.constant 0 : i32
    %c0_i32_0 = arith.constant 0 : i32
    %c0_i32_1 = arith.constant 0 : i32
    return %arg0, %c0_i32, %c0_i32_0 : i32, i32, i32
  }
  func.func @transform_1(%arg0: i32, %arg1: i32) -> (i32, i32, i32) {
    %c0_i32 = arith.constant 0 : i32
    %c0_i32_0 = arith.constant 0 : i32
    %c0_i32_1 = arith.constant 0 : i32
    return %arg0, %c0_i32, %c0_i32_0 : i32, i32, i32
  }
  func.func @transform_2(%arg0: i32, %arg1: i32) -> (i32, i32, i32) {
    %c0_i32 = arith.constant 0 : i32
    %c0_i32_0 = arith.constant 0 : i32
    %c0_i32_1 = arith.constant 0 : i32
    return %arg1, %c0_i32, %c0_i32_0 : i32, i32, i32
  }
  func.func @transform_3(%arg0: i32, %arg1: i32) -> (i32, i32, i32) {
    %c0_i32 = arith.constant 0 : i32
    %c0_i32_0 = arith.constant 0 : i32
    %c0_i32_1 = arith.constant 0 : i32
    return %arg1, %c0_i32, %c0_i32_0 : i32, i32, i32
  }
  func.func @transform_4(%arg0: i32, %arg1: i32) -> (i32, i32, i32) {
    %c0_i32 = arith.constant 0 : i32
    %c0_i32_0 = arith.constant 0 : i32
    %c0_i32_1 = arith.constant 0 : i32
    return %arg1, %c0_i32, %c0_i32_0 : i32, i32, i32
  }
  func.func @transform_5(%arg0: i32, %arg1: i32) -> (i32, i32, i32) {
    %c0_i32 = arith.constant 0 : i32
    %c0_i32_0 = arith.constant 0 : i32
    %c0_i32_1 = arith.constant 0 : i32
    return %arg1, %c0_i32, %c0_i32_0 : i32, i32, i32
  }
  func.func @transform_6(%arg0: i32, %arg1: i32) -> (i32, i32, i32) {
    %c0_i32 = arith.constant 0 : i32
    %c0_i32_0 = arith.constant 0 : i32
    %c0_i32_1 = arith.constant 0 : i32
    return %arg1, %c0_i32, %c0_i32_0 : i32, i32, i32
  }
  func.func @transform_7(%arg0: i32, %arg1: i32) -> (i32, i32, i32) {
    %c0_i32 = arith.constant 0 : i32
    %c0_i32_0 = arith.constant 0 : i32
    %c0_i32_1 = arith.constant 0 : i32
    return %arg1, %c0_i32, %c0_i32_0 : i32, i32, i32
  }
  func.func @transform_8(%arg0: i32, %arg1: i32) -> (i32, i32, i32, i32) {
    %c0_i32 = arith.constant 0 : i32
    %c0_i32_0 = arith.constant 0 : i32
    %c0_i32_1 = arith.constant 0 : i32
    %c0_i32_2 = arith.constant 0 : i32
    return %arg1, %c0_i32, %c0_i32_0, %c0_i32_1 : i32, i32, i32, i32
  }
  func.func @transform_9(%arg0: i32, %arg1: i32) -> (i32, i32, i32) {
    %c0_i32 = arith.constant 0 : i32
    %c0_i32_0 = arith.constant 0 : i32
    %c0_i32_1 = arith.constant 0 : i32
    return %arg1, %c0_i32, %c0_i32_0 : i32, i32, i32
  }
  func.func @transform_10(%arg0: i32, %arg1: i32) -> (i32, i32, i32, i32) {
    %c0_i32 = arith.constant 0 : i32
    %c0_i32_0 = arith.constant 0 : i32
    %c0_i32_1 = arith.constant 0 : i32
    %c0_i32_2 = arith.constant 0 : i32
    return %arg1, %c0_i32, %c0_i32_0, %c0_i32_1 : i32, i32, i32, i32
  }
  func.func @transform_11(%arg0: i32, %arg1: i32) -> (i32, i32, i32) {
    %c0_i32 = arith.constant 0 : i32
    %c0_i32_0 = arith.constant 0 : i32
    %c0_i32_1 = arith.constant 0 : i32
    return %arg1, %c0_i32, %c0_i32_0 : i32, i32, i32
  }
  func.func @transform_12(%arg0: i32, %arg1: i32) -> (i32, i32, i32) {
    %c0_i32 = arith.constant 0 : i32
    %c0_i32_0 = arith.constant 0 : i32
    %c0_i32_1 = arith.constant 0 : i32
    return %arg1, %c0_i32, %c0_i32_0 : i32, i32, i32
  }
  func.func @transform_13(%arg0: i32, %arg1: i32) -> (i32, i32, i32) {
    %c0_i32 = arith.constant 0 : i32
    %c0_i32_0 = arith.constant 0 : i32
    %c0_i32_1 = arith.constant 0 : i32
    return %arg1, %c0_i32, %c0_i32_0 : i32, i32, i32
  }
  func.func @transform_14(%arg0: i32, %arg1: i32) -> (i32, i32, i32) {
    %c0_i32 = arith.constant 0 : i32
    %c0_i32_0 = arith.constant 0 : i32
    %c0_i32_1 = arith.constant 0 : i32
    return %arg0, %c0_i32, %c0_i32_0 : i32, i32, i32
  }
}

</mosaic_0001>

<bundles_post_ra>
// kernel: tpu_custom_call.1
= control target key start
LH: loop header
LB: loop body
LE: loop exit
PB: predicated region body
PF: predicated region fallthrough
CT: control target
= control target key end

     0   :  { %s2914_s0 = inlined_call_operand.vmem [shape: f32[2,16,32], index: 0, kind: input, shape index: {}]   ;;  %s2915_s1 = inlined_call_operand.vmem [shape: f32[2,1,16], index: 1, kind: input, shape index: {}]   ;;  %s2916_s2 = inlined_call_operand.vmem [shape: bf16[2,32,96], index: 2, kind: input, shape index: {}]   ;;  %s2917_s3 = inlined_call_operand.vmem [shape: f32[2,1,96], index: 3, kind: input, shape index: {}]   ;;  %s2918_s4 = inlined_call_operand.vmem [shape: bf16[2,32,32], index: 4, kind: input, shape index: {}]   ;;  %s2919_s5 = inlined_call_operand.vmem [shape: f32[2,1,32], index: 5, kind: input, shape index: {}]   ;;  %s2920_s6 = inlined_call_operand.vmem [shape: f32[2,1,32], index: 6, kind: input, shape index: {}]   ;;  %s2921_s7 = inlined_call_operand.vmem [shape: f32[2,1,32], index: 7, kind: input, shape index: {}]   ;;  %s2922_s8 = inlined_call_operand.vmem [shape: bf16[2,3,32,64], index: 8, kind: input, shape index: {}]   ;;  %s2923_s9 = inlined_call_operand.vmem [shape: f32[2,1,64], index: 9, kind: input, shape index: {}]   ;;  %s2924_s10 = inlined_call_operand.vmem [shape: bf16[2,3,64,32], index: 10, kind: input, shape index: {}]   ;;  %s2925_s11 = inlined_call_operand.vmem [shape: f32[2,1,32], index: 11, kind: input, shape index: {}]   ;;  %s2926_s12 = inlined_call_operand.vmem [shape: f32[2,1,32], index: 12, kind: input, shape index: {}]   ;;  %s2927_s13 = inlined_call_operand.vmem [shape: f32[2,1,32], index: 13, kind: input, shape index: {}]   ;;  %s2928_s14 = inlined_call_operand.hbm [shape: f32[2,16,32], index: 14, kind: output, shape index: {}]  }
   0x1   :  { %2944 = sst [smem:[#allocation19_spill]] %s2914_s0 }
   0x2   :  { %2945 = sst [smem:[#allocation20_spill]] %s2916_s2 }
   0x3   :  { %2946 = sst [smem:[#allocation21_spill]] %s2918_s4 }
   0x4   :  { %2947 = sst [smem:[#allocation22_spill]] %s2920_s6 }
   0x5   :  { %2948 = sst [smem:[#allocation23_spill]] %s2921_s7 }
   0x6   :  { %2949 = sst [smem:[#allocation24_spill]] %s2923_s9 }
   0x7   :  { %2950 = sst [smem:[#allocation25_spill]] %s2924_s10 }
   0x8   :  { %2951 = sst [smem:[#allocation26_spill]] %s2926_s12 }
   0x9   :  { %2952 = sst [smem:[#allocation27_spill]] %s2927_s13 }
   0xa   :  { %2953 = sst [smem:[#allocation28_spill]] %s2928_s14 }
   0xb   :  { %19 = vsyncpa [#allocation4], 0 }
   0xc   :  { %21 = vsyncpa [#allocation4 + $0x1], 0  ;;  %s2492_s29 = smov 0   ;;  %s2494_s30 = smov 0  }
   0xd   :  { %s2496_s15 = smov 0   ;;  %s2498_s16 = smov 0  }
   0xe   :  { %s2500_s17 = smov 0   ;;  %s2502_s18 = smov 0  }
   0xf   :  { %s2504_s19 = smov 0   ;;  %s2506_s20 = smov 0  }
  0x10 LB: > { %2954 = sst [smem:[#allocation6_spill]] %s2376_s29  ;;  %s1945_s21 = sadd.s32 4294967295, %s2404_s20   ;;  %s2404_s20 = sphi %s2506_s20, %s27_s20   ;;  %s2400_s19 = sphi %s2504_s19, %s3006_s19   ;;  %s2396_s18 = sphi %s2502_s18, %s3005_s18   ;;  %s2392_s17 = sphi %s2500_s17, %s3004_s17   ;;  %s2388_s16 = sphi %s2498_s16, %s3003_s16   ;;  %s2384_s15 = sphi %s2496_s15, %s3002_s15   ;;  %s2380_s30 = sphi %s2494_s30, %s3001_s30   ;;  %s2376_s29 = sphi %s2492_s29, %s3000_s29  }
  0x11   : > { %2955 = sst [smem:[#allocation7_spill]] %s2380_s30  ;;  %s1946_s22 = sadd.s32 4294967294, %s2404_s20  }
  0x12   : > { %2956 = sst [smem:[#allocation8_spill]] %s2384_s15  ;;  %s36_s23 = sadd.s32 1, %s2396_s18 }
  0x13   : > { %2957 = sst [smem:[#allocation9_spill]] %s2388_s16  ;;  %p37_p0 = scmp.ge.s32.totalorder %s36_s23, 2 }
  0x14   : > { %2958 = sst [smem:[#allocation10_spill]] %s2392_s17  ;;  %s39_s24 = sadd.s32 1, %s2400_s19 }
  0x15   : > { %2959 = sst [smem:[#allocation11_spill]] %s2396_s18  ;;  %p420_p1 = scmp.ne.s32.totalorder %s2384_s15, %s2380_s30 }
  0x16   : > { %2960 = sst [smem:[#allocation12_spill]] %s2400_s19  ;;  %p421_p2 = scmp.eq.s32.totalorder %s1945_s21, 3 }
  0x17   : > { %2961 = sst [smem:[#allocation13_spill]] %s2404_s20  ;;  %s3008_s23 = smov (%p37_p0, %s36_s23), 0 }
  0x18   : > { %2962 = sst [smem:[#allocation14_spill]] %s3008_s23  ;;  %s3010_s24 = smov (!%p37_p0, %s39_s24), %s2400_s19 }
  0x19   : > { %p2541_p3 = por %p421_p2, %p420_p1  ;;  %p426_p4 = scmp.ne.s32.totalorder %s2380_s30, %s2376_s29 }
  0x1a   : > { %p41_p5 = scmp.ge.s32.totalorder %s3010_s24, 2  ;;  %p427_p6 = scmp.eq.s32.totalorder %s1946_s22, 3 }
  0x1b   : > { %s2963_s25 = scalar_select %p2541_p3, 1, 0 }
  0x1c   : > { %p1949_p7 = scmp.ge.s32.totalorder %s2404_s20, 1  ;;  %p539_p8 = scmp.lt.s32.totalorder %s2404_s20, 5 }
  0x1d   : > { %2964 = sst [smem:[#allocation15_spill]] %s2963_s25  ;;  %s3012_s24 = smov (%p41_p5, %s3010_s24), 0 }
  0x1e   : > { %2965 = sst [smem:[#allocation16_spill]] %s3012_s24  ;;  %p2551_p9 = por %p427_p6, %p426_p4 }
  0x1f   : > { %p540_p10 = pnand %p1949_p7, %p539_p8  ;;  %s407_s27 = ssub.s32 %s2400_s19, %s3012_s24 }
  0x20   : > { %s2966_s26 = scalar_select %p2551_p9, 1, 0 }
  0x21   : > { %s410_s28 = sadd.s32 1, %s2384_s15  ;;  %p408_p11 = scmp.eq.s32.totalorder %s407_s27, 0 }
  0x22   : > { %2967 = sst [smem:[#allocation17_spill]] %s2966_s26  ;;  %543 = sbr.rel (%p540_p10) target bundleno = 2659 (0xa63), region = 76 }
  0x23   : > { %s2559_s21 = scalar_select %p408_p11, %s2384_s15, %s410_s28  }
  0x24   : > { %s2931_s22 = sand.u32 (!%p540_p10), 1, %s2380_s30   ;;  %p632_p12 = scmp.lt.s32.totalorder (!%p540_p10), %s2392_s17, 1 }
  0x25   : > { %2968 = sst [smem:[#allocation18_spill]] %s2559_s21  ;;  %s1950_s23 = sshll.u32 (!%p540_p10), %s2931_s22, 4 }
  0x26   : > { %p640_p13 = scmp.lt.s32.totalorder (!%p540_p10), %s2388_s16, 1  ;;  %s2969_s0 = sld [smem:[#allocation19_spill]] (!%p540_p10) }
  0x27   : > { %s2970_s2 = sld [smem:[#allocation20_spill]] (!%p540_p10)  ;;  %s2971_s4 = sld [smem:[#allocation21_spill]] (!%p540_p10) }
  0x28   : > { %s2975_s19 = sld [smem:[#allocation26_spill]] (!%p540_p10)  ;;  %s2976_s7 = sld [smem:[#allocation25_spill]] (!%p540_p10) }
  0x29   : > { %s2567_s18 = scalar_select %p632_p12, %s2392_s17, 1 }
  0x2a   : > { %s2570_s24 = scalar_select %p640_p13, %s2388_s16, 1 }
  0x2b   : > { %s2034_s27 = sshll.u32 %s2567_s18, 4  ;;  %s2977_s16 = sld [smem:[#allocation27_spill]] }
  0x2c   : > { %s636_s26 = scalar_lea.vmem %s2969_s0, %s2034_s27  ;;  %s2035_s29 = sshll.u32 %s2570_s24, 4 }
  0x2d   : > { %s644_s25 = scalar_lea.vmem %s2970_s2, %s2035_s29  ;;  %s2591_s12 = scalar_lea.vmem %s2971_s4, %s2035_s29 }
  0x2e   : > { %s2176_s2 = smul.u32 48, %s2570_s24  ;;  %s677_s4 = scalar_lea.vmem %s2925_s11, %s2570_s24 }
  0x2f   : > { %s2177_s10 = smul.u32 96, %s2570_s24  ;;  %s680_s0 = scalar_lea.vmem %s2975_s19, %s2570_s24 }
  0x30   : > { %s2618_s15 = scalar_lea.vmem %s2922_s8, %s2176_s2  ;;  %s2633_s13 = scalar_lea.vmem [#allocation3], %s1950_s23 }
  0x31   : > { %s2627_s6 = scalar_lea.vmem %s2976_s7, %s2177_s10  ;;  %s683_s9 = scalar_lea.vmem %s2977_s16, %s2570_s24 }
  0x32   : > { %s2978_s29 = sld [smem:[#allocation9_spill]] }
  0x38   : > { %p1959_p0 = scmp.ne.s32.totalorder %s2978_s29, 0 }
  0x39   : > { %v689_v0 = vld [vmem:[%s636_s26] sm:$0xff] (!%p1959_p0)  ;;  %vm691_vm0 = vcmask (!%p1959_p0), 261120   ;;  %v690_v1 = vld [vmem:[%s636_s26 + $0x8] sm:$0xff] (!%p1959_p0) }
  0x3a   : > { %688 = sbr.rel (%p1959_p0) target bundleno = 65 (0x41), region = 80  ;;  %692 = vst.msk [vmem:[#allocation2] sm:$0xff] (!%p1959_p0), %vm691_vm0, %v689_v0  ;;  %693 = vst.msk [vmem:[#allocation2 + $0x8] sm:$0xff] (!%p1959_p0), %vm691_vm0, %v690_v1 }
  0x41 PF: > { %v2264_v2 = vld [vmem:[%s644_s25] sm:$0xff]   ;;  %v2406_v3 = vmov 0.0   ;;  %v2265_v4 = vld [vmem:[%s644_s25 + $0x8] sm:$0xff]   ;;  %vm2407_vm1 = vmmov 0   ;;  %vm749_vm2 = vcmask 261120   ;;  %s2979_s16 = scalar_lea.vmem %s2917_s3, %s2570_s24  ;;  %s2408_s19 = smov 112   ;;  %v698_v21 = vlaneseq }
  0x42   : > { %2076 = vmatprep.subr.bf16.mxu0 %v2406_v3  ;;  %2084 = vmatprep.subr.bf16.mxu1 %v2406_v3  ;;  %v2640_v5 = vld [vmem:[#allocation2] sm:$0xff]  ;;  %v2642_v6 = vld [vmem:[#allocation2 + $0x8] sm:$0xff]  ;;  %s2409_s23 = smov 96   ;;  %s2410_s25 = smov 80   ;;  %vm718_vm3 = vcmask 130048   ;;  %vm1179_vm6 = vcmask 1040384  }
  0x43   : > { %2077 = vmatpush3.bf16.msra.mxu0 %v2264_v2  ;;  %2080 = vmatprep.mubr.msk.bf16.mxu0 %vm2407_vm1, %v2406_v3  ;;  %v725_v7 = vpack.c.bf16 %v2642_v6, %v2640_v5  ;;  %v1962_v8 = vld [vmem:[%s2979_s16] ss:$0 sm:$0xff]  ;;  %v2675_v22 = vshrl.u32 %v698_v21, 7  ;;  %s2980_s10 = scalar_lea.vmem %s2915_s1, %s2567_s18  ;;  %s2411_s18 = smov 48   ;;  %vm1199_vm7 = vsmask.f32 7424 }
  0x44   : > { %2078 = vmatprep.subr.bf16.mxu0 %v2406_v3  ;;  %2086 = vmatprep.mubr.msk.bf16.mxu1 %vm2407_vm1, %v2406_v3  ;;  %v2682_v23 = vld [vmem:[%s2980_s10] sm:$0x1]  ;;  %s2412_s22 = smov 64   ;;  %s2413_s28 = smov 16   ;;  %vm1330_vm8 = vcmask 1046528   ;;  %vm1468_vm9 = vcmask 523264  }
  0x45   : > { %v697_v24 = vmul.f32 1e+09, %v2682_v23  ;;  %v713_v25 = vsub.s32 0, %v2675_v22  ;;  %s2981_s27 = scalar_lea.vmem %s2919_s5, %s2570_s24  ;;  %s2982_s17 = sld [smem:[#allocation22_spill]] }
  0x46   : > { %s2984_s16 = sld [smem:[#allocation23_spill]] }
  0x47   : > { %2079 = vmatpush3.bf16.msra.mxu0 %v2265_v4  ;;  %v851_v26 = vrot.slane %v697_v24, %v713_v25 }
  0x48   : > { %2090 = vmatprep.subr.bf16.mxu0 %v2406_v3 }
  0x4a   : > { %2081 = vmatmul.mubr.msk.bf16.vlgmr.msra.gmra.mrb[0].mxu0 %vm749_vm2, %v725_v7 }
  0x4b   : > { %2092 = vmatprep.mubr.msk.bf16.mxu0 %vm2407_vm1, %v2406_v3  ;;  %s2983_s29 = scalar_lea.vmem %s2982_s17, %s2570_s24 }
 0x11d   : > { %v787_v9 = vpop.f32.mrb[0].mxu0 }
 0x11e   : > { %v2082_v10 = vpop.f32.mrb[1].mxu0  ;;  %v788_v12 = vadd.f32 %v1962_v8, %v787_v9 }
 0x11f   : > { %v790_v11 = vpop.f32.mrb[2].mxu0 }
 0x120   : > { %v791_v13 = vadd.f32 %v1962_v8, %v790_v11  ;;  %v2083_v14 = vpop.f32.mrb[3].mxu0 }
 0x122   : > { %v2658_v15 = vpack.c.bf16 %v791_v13, %v788_v12 }
 0x124   : > { %925 = vrot.lane.b32.xlu1 %v2658_v15, %s2408_s19  ;;  %796 = vrot.lane.b32.xlu0 %v2658_v15, %s2409_s23  ;;  %s2985_s19 = scalar_lea.vmem %s2984_s16, %s2570_s24 }
 0x128   : > { %927 = vrot.lane.b32.xlu0 %v2658_v15, %s2410_s25  ;;  %s2986_s25 = sld [smem:[#allocation24_spill]] }
 0x12e   : > { %s2987_s26 = scalar_lea.vmem %s2986_s25, %s2570_s24 }
 0x196   : > { %v797_v16 = vpop.permute.xlu0 %796  ;;  %v926_v20 = vpop.permute.xlu1 %925 }
 0x197   : > { %v802_v17 = vsel %vm718_vm3, %v797_v16, 0 }
 0x198   : > { %2085 = vmatpush3.bf16.xpose.msra.mxu1 %v802_v17 }
 0x199   : > { %2096 = vmatprep.subr.bf16.mxu1 %v2406_v3 }
 0x19a   : > { %v928_v18 = vpop.permute.xlu0 %927 }
 0x19b   : > { %v933_v19 = vsel %vm718_vm3, %v928_v18, 0 }
 0x19f   : > { %2087 = vmatmul.mubr.msk.bf16.vlgmr.msra.gmra.mrb[0].mxu1 %vm718_vm3, %v2658_v15 }
 0x1a0   : > { %2097 = vmatpush3.bf16.xpose.msra.mxu1 %v933_v19  ;;  %2098 = vmatprep.mubr.msk.bf16.mxu1 %vm2407_vm1, %v2406_v3 }
 0x1a1   : > { %2108 = vmatprep.subr.bf16.mxu1 %v2406_v3 }
 0x1a7   : > { %2099 = vmatmul.mubr.msk.bf16.vlgmr.msra.gmra.mrb[4].mxu1 %vm718_vm3, %v926_v20 }
 0x1a8   : > { %2112 = vmatprep.mubr.msk.bf16.mxu1 %vm2407_vm1, %v2406_v3 }
 0x272   : > { %v838_v27 = vpop.f32.mrb[0].mxu1 }
 0x273   : > { %v845_v28 = vmul.f32 0.25, %v838_v27  ;;  %v2088_v29 = vpop.f32.mrb[1].mxu1 }
 0x274   : > { %v841_v30 = vpop.f32.mrb[2].mxu1  ;;  %v2267_v29 = vld [vmem:[%s2591_s12 + $0x8] sm:$0xff]  }
 0x275   : > { %v846_v31 = vmul.f32 0.25, %v841_v30  ;;  %v2089_v32 = vpop.f32.mrb[3].mxu1  ;;  %v853_v33 = vsub.f32 %v845_v28, %v851_v26 }
 0x277   : > { %v855_v34 = vsel %vm718_vm3, %v853_v33, -inf  ;;  %v854_v35 = vsub.f32 %v846_v31, %v851_v26 }
 0x278   : > { %856 = vmax.xlane.f32.xlu1 %v855_v34 }
 0x279   : > { %v858_v36 = vsel %vm718_vm3, %v854_v35, -inf }
 0x27a   : > { %859 = vmax.xlane.f32.xlu0 %v858_v36  ;;  %v969_v37 = vpop.f32.mrb[4].mxu1 }
 0x27b   : > { %v976_v38 = vmul.f32 0.25, %v969_v37  ;;  %v2100_v39 = vpop.f32.mrb[5].mxu1 }
 0x27c   : > { %v972_v40 = vpop.f32.mrb[6].mxu1 }
 0x27d   : > { %v977_v41 = vmul.f32 0.25, %v972_v40  ;;  %v2101_v42 = vpop.f32.mrb[7].mxu1  ;;  %v978_v43 = vsub.f32 %v976_v38, %v851_v26 }
 0x27f   : > { %v980_v44 = vsel %vm718_vm3, %v978_v43, -inf  ;;  %v979_v45 = vsub.f32 %v977_v41, %v851_v26  ;;  %v2266_v26 = vld [vmem:[%s2591_s12] sm:$0xff]  }
 0x280   : > { %981 = vmax.xlane.f32.xlu0 %v980_v44  ;;  %2109 = vmatpush3.bf16.msra.mxu1 %v2266_v26 }
 0x281   : > { %v983_v46 = vsel %vm718_vm3, %v979_v45, -inf  ;;  %2110 = vmatprep.subr.bf16.mxu1 %v2406_v3 }
 0x282   : > { %984 = vmax.xlane.f32.xlu1 %v983_v46 }
 0x284   : > { %2111 = vmatpush3.bf16.msra.mxu1 %v2267_v29 }
 0x285   : > { %2124 = vmatprep.subr.bf16.mxu1 %v2406_v3 }
 0x305   : > { %v857_v47 = vpop.xlane.xlu1 %856 }
 0x306   : > { %v861_v48 = vsub.f32 %v853_v33, %v857_v47 }
 0x307   : > { %v860_v49 = vpop.xlane.xlu0 %859 }
 0x308   : > { %v863_v50 = vmul.f32 1.442695, %v861_v48  ;;  %v862_v51 = vsub.f32 %v854_v35, %v860_v49 }
 0x30a   : > { %2286 = vpow2.f32 %v863_v50  ;;  %v865_v52 = vmul.f32 1.442695, %v862_v51 }
 0x30c   : > { %2288 = vpow2.f32 %v865_v52 }
 0x30d   : > { %v982_v53 = vpop.xlane.xlu0 %981 }
 0x30e   : > { %v986_v54 = vsub.f32 %v978_v43, %v982_v53  ;;  %v1970_v43 = vld [vmem:[%s2981_s27] ss:$0 sm:$0xff] }
 0x30f   : > { %v985_v55 = vpop.xlane.xlu1 %984 }
 0x310   : > { %v988_v56 = vmul.f32 1.442695, %v986_v54  ;;  %v987_v57 = vsub.f32 %v979_v45, %v985_v55  ;;  %v702_v54 = vand.u32 127, %v698_v21  ;;  %v709_v55 = vsub.f32 1.0, %v2682_v23 }
 0x312   : > { %2290 = vpow2.f32 %v988_v56  ;;  %v990_v58 = vmul.f32 1.442695, %v987_v57  ;;  %v700_v56 = vadd.s32 8, %v2675_v22  ;;  %vm703_vm4 = vcmp.eq.s32.totalorder %v2675_v22, %v702_v54 }
 0x313   : > { %v714_v57 = vrot.slane %v709_v55, %v713_v25  ;;  %v2275_v55 = vld [vmem:[%s2627_s6 + $0x8] sm:$0xff]  }
 0x314   : > { %v2287_v59 = vpop.eup %2286  ;;  %2292 = vpow2.f32 %v990_v58  ;;  %vm704_vm5 = vcmp.eq.s32.totalorder %v700_v56, %v702_v54  ;;  %v2274_v54 = vld [vmem:[%s2627_s6] sm:$0xff]  }
 0x315   : > { %v867_v60 = vsel %vm718_vm3, %v2287_v59, 0.0  ;;  %v2276_v56 = vld [vmem:[%s2627_s6 + $0x20] sm:$0xff]  }
 0x316   : > { %v2289_v61 = vpop.eup %2288  ;;  %868 = vadd.xlane.f32.xlu0 %v867_v60 }
 0x317   : > { %v870_v62 = vsel %vm718_vm3, %v2289_v61, 0.0 }
 0x318   : > { %871 = vadd.xlane.f32.xlu1 %v870_v62 }
 0x31c   : > { %v2291_v63 = vpop.eup %2290 }
 0x31d   : > { %v992_v0 = vsel %vm718_vm3, %v2291_v63, 0.0 }
 0x31e   : > { %v2293_v1 = vpop.eup %2292  ;;  %993 = vadd.xlane.f32.xlu0 %v992_v0 }
 0x31f   : > { %v995_v2 = vsel %vm718_vm3, %v2293_v1, 0.0 }
 0x320   : > { %996 = vadd.xlane.f32.xlu1 %v995_v2 }
 0x331   : > { %1003 = vrot.lane.b32.xlu1 %v2658_v15, %s2411_s18 }
 0x334   : > { %878 = vrot.lane.b32.xlu0 %v2658_v15, %s2412_s22 }
 0x3a3   : > { %v869_v4 = vpop.xlane.xlu0 %868 }
 0x3a4   : > { %2294 = vrcp.f32 %v869_v4 }
 0x3a5   : > { %v872_v7 = vpop.xlane.xlu1 %871 }
 0x3a6   : > { %2296 = vrcp.f32 %v872_v7  ;;  %v2268_v7 = vld [vmem:[%s2618_s15] sm:$0xff]  }
 0x3ab   : > { %v994_v8 = vpop.xlane.xlu0 %993 }
 0x3ac   : > { %2298 = vrcp.f32 %v994_v8  ;;  %v2269_v8 = vld [vmem:[%s2618_s15 + $0x8] sm:$0xff]  }
 0x3ad   : > { %v997_v9 = vpop.xlane.xlu1 %996 }
 0x3ae   : > { %v2295_v10 = vpop.eup %2294  ;;  %2300 = vrcp.f32 %v997_v9  ;;  %v2270_v9 = vld [vmem:[%s2618_s15 + $0x10] sm:$0xff]  }
 0x3af   : > { %v879_v11 = vpop.permute.xlu0 %878  ;;  %v875_v13 = vmul.f32 %v2295_v10, %v2287_v59  ;;  %v2271_v10 = vld [vmem:[%s2618_s15 + $0x18] sm:$0xff]  }
 0x3b0   : > { %v2297_v12 = vpop.eup %2296  ;;  %2091 = vmatpush3.bf16.msra.mxu0 %v879_v11 }
 0x3b1   : > { %v876_v14 = vmul.f32 %v2297_v12, %v2289_v61  ;;  %2102 = vmatprep.subr.bf16.mxu0 %v2406_v3  ;;  %v1004_v17 = vpop.permute.xlu1 %1003 }
 0x3b3   : > { %v877_v16 = vpack.c.bf16 %v876_v14, %v875_v13 }
 0x3b5   : > { %2093 = vmatmul.mubr.msk.bf16.vlgmr.msra.gmra.mrb[4].mxu0 %vm718_vm3, %v877_v16 }
 0x3b6   : > { %v2299_v15 = vpop.eup %2298  ;;  %2103 = vmatpush3.bf16.msra.mxu0 %v1004_v17  ;;  %2104 = vmatprep.mubr.msk.bf16.mxu0 %vm2407_vm1, %v2406_v3 }
 0x3b7   : > { %2116 = vmatprep.subr.bf16.mxu0 %v2406_v3  ;;  %v1000_v19 = vmul.f32 %v2299_v15, %v2291_v63 }
 0x3b8   : > { %v2301_v18 = vpop.eup %2300 }
 0x3b9   : > { %v1001_v20 = vmul.f32 %v2301_v18, %v2293_v1  ;;  %v1974_v18 = vld [vmem:[%s2983_s29] ss:$0 sm:$0xff] }
 0x3bb   : > { %v1002_v24 = vpack.c.bf16 %v1001_v20, %v1000_v19  ;;  %v1975_v20 = vld [vmem:[%s2985_s19] ss:$0 sm:$0xff] }
 0x3bd   : > { %2105 = vmatmul.mubr.msk.bf16.vlgmr.msra.gmra.mrb[8].mxu0 %vm718_vm3, %v1002_v24 }
 0x3be   : > { %2120 = vmatprep.mubr.msk.bf16.mxu0 %vm2407_vm1, %v2406_v3  ;;  %2117 = vmatpush3.bf16.msra.mxu0 %v2270_v9 }
 0x3bf   : > { %2118 = vmatprep.subr.bf16.mxu0 %v2406_v3 }
 0x3c2   : > { %2119 = vmatpush3.bf16.msra.mxu0 %v2271_v10 }
 0x3c3   : > { %2132 = vmatprep.subr.bf16.mxu0 %v2406_v3 }
 0x488   : > { %v918_v27 = vpop.f32.mrb[4].mxu0 }
 0x489   : > { %v2094_v28 = vpop.f32.mrb[5].mxu0 }
 0x48a   : > { %v921_v30 = vpop.f32.mrb[6].mxu0 }
 0x48b   : > { %v2095_v31 = vpop.f32.mrb[7].mxu0 }
 0x490   : > { %v1043_v32 = vpop.f32.mrb[8].mxu0 }
 0x491   : > { %v2106_v33 = vpop.f32.mrb[9].mxu0 }
 0x492   : > { %v1046_v34 = vpop.f32.mrb[10].mxu0 }
 0x493   : > { %v2259_v35 = vpack.i.bf16 %v1046_v34, %v1043_v32  ;;  %v2107_v36 = vpop.f32.mrb[11].mxu0 }
 0x495   : > { %2260 = vrot.lane.b32.xlu1 %v2259_v35, %s2413_s28 }
 0x507   : > { %v2261_v37 = vpop.permute.xlu1 %2260 }
 0x508   : > { %v2263_v38 = vunpack.i.h.bf16 %v2261_v37  ;;  %v2262_v39 = vunpack.i.l.bf16 %v2261_v37 }
 0x50a   : > { %v1059_v40 = vsel %vm718_vm3, %v921_v30, %v2263_v38  ;;  %v1058_v41 = vsel %vm718_vm3, %v918_v27, %v2262_v39 }
 0x50b   : > { %v1060_v42 = vpack.c.bf16 %v1059_v40, %v1058_v41 }
 0x50d   : > { %2113 = vmatmul.mubr.msk.bf16.vlgmr.msra.gmra.mrb[8].mxu1 %vm749_vm2, %v1060_v42 }
 0x50e   : > { %2128 = vmatprep.mubr.msk.bf16.mxu1 %vm2407_vm1, %v2406_v3  ;;  %2125 = vmatpush3.bf16.msra.mxu1 %v2268_v7 }
 0x50f   : > { %2126 = vmatprep.subr.bf16.mxu1 %v2406_v3 }
 0x512   : > { %2127 = vmatpush3.bf16.msra.mxu1 %v2269_v8 }
 0x513   : > { %2140 = vmatprep.subr.bf16.mxu1 %v2406_v3 }
 0x5e0   : > { %v1121_v44 = vpop.f32.mrb[8].mxu1 }
 0x5e1   : > { %v1122_v45 = vadd.f32 %v1970_v43, %v1121_v44  ;;  %v2114_v46 = vpop.f32.mrb[9].mxu1 }
 0x5e2   : > { %v1124_v47 = vpop.f32.mrb[10].mxu1 }
 0x5e3   : > { %v1125_v48 = vadd.f32 %v1970_v43, %v1124_v47  ;;  %v2115_v49 = vpop.f32.mrb[11].mxu1  ;;  %v1128_v50 = vadd.f32 %v1122_v45, %v2640_v5  ;;  %v1960_v5 = vsel %vm703_vm4, 1.0, %v2406_v3 }
 0x5e4   : > { %v716_v58 = vmul.f32 %v1960_v5, %v714_v57  ;;  %v2278_v5 = vld [vmem:[%s2627_s6 + $0x28] sm:$0xff]  }
 0x5e5   : > { %v1132_v51 = vsel %vm749_vm2, %v1128_v50, 0.0  ;;  %v1129_v52 = vadd.f32 %v1125_v48, %v2642_v6  ;;  %v1961_v6 = vsel %vm704_vm5, 1.0, %v2406_v3  ;;  %v2272_v48 = vld [vmem:[%s2618_s15 + $0x20] sm:$0xff]  }
 0x5e6   : > { %1133 = vadd.xlane.f32.xlu0 %v1132_v51  ;;  %v717_v59 = vmul.f32 %v1961_v6, %v714_v57  ;;  %v719_v60 = vsel %vm718_vm3, %v716_v58, 0.0  ;;  %v2277_v57 = vld [vmem:[%s2627_s6 + $0x10] sm:$0xff]   ;;  %v2279_v6 = vld [vmem:[%s2627_s6 + $0x18] sm:$0xff]  }
 0x5e7   : > { %v1135_v53 = vsel %vm749_vm2, %v1129_v52, 0.0  ;;  %v2280_v58 = vld [vmem:[%s2627_s6 + $0x30] sm:$0xff]  }
 0x5e8   : > { %1136 = vadd.xlane.f32.xlu1 %v1135_v53  ;;  %v722_v4 = vsel %vm718_vm3, %v717_v59, 0.0  ;;  %v2281_v59 = vld [vmem:[%s2627_s6 + $0x38] sm:$0xff]  }
 0x5ec   : > { %720 = vadd.xlane.f32.xlu1 %v719_v60 }
 0x673   : > { %v1134_v21 = vpop.xlane.xlu0 %1133 }
 0x674   : > { %v1139_v23 = vmul.f32 0.03125, %v1134_v21 }
 0x675   : > { %v1137_v61 = vpop.xlane.xlu1 %1136 }
 0x676   : > { %v1141_v62 = vsub.f32 %v1128_v50, %v1139_v23  ;;  %v1140_v63 = vmul.f32 0.03125, %v1137_v61  ;;  %v2273_v50 = vld [vmem:[%s2618_s15 + $0x28] sm:$0xff]  }
 0x678   : > { %v1142_v22 = vsub.f32 %v1129_v52, %v1140_v63  ;;  %v1143_v25 = vmul.f32 %v1141_v62, %v1141_v62 }
 0x679   : > { %v2754_v27 = vpop.xlane.xlu1 %720 }
 0x67a   : > { %v1145_v0 = vsel %vm749_vm2, %v1143_v25, 0.0  ;;  %v1144_v1 = vmul.f32 %v1142_v22, %v1142_v22 }
 0x67b   : > { %1146 = vadd.xlane.f32.xlu0 %v1145_v0 }
 0x67c   : > { %v1148_v2 = vsel %vm749_vm2, %v1144_v1, 0.0 }
 0x67f   : > { %1149 = vadd.xlane.f32.xlu0 %v1148_v2 }
 0x683   : > { %723 = vadd.xlane.f32.xlu0 %v722_v4  ;;  %v1993_v4 = vld [vmem:[%s2987_s26] ss:$0 sm:$0xff] }
 0x708   : > { %v1147_v11 = vpop.xlane.xlu0 %1146 }
 0x709   : > { %v1151_v12 = vmul.f32 0.03125, %v1147_v11 }
 0x70b   : > { %v1153_v13 = vadd.f32 1e-05, %v1151_v12 }
 0x70c   : > { %v1150_v14 = vpop.xlane.xlu0 %1149 }
 0x70d   : > { %2302 = vrsqrt.f32 %v1153_v13  ;;  %v1152_v16 = vmul.f32 0.03125, %v1150_v14 }
 0x70f   : > { %v1154_v17 = vadd.f32 1e-05, %v1152_v16 }
 0x710   : > { %v2759_v32 = vpop.xlane.xlu0 %723 }
 0x711   : > { %2304 = vrsqrt.f32 %v1154_v17 }
 0x717   : > { %v2303_v15 = vpop.eup %2302 }
 0x718   : > { %v1157_v19 = vmul.f32 %v2303_v15, %v1141_v62 }
 0x71a   : > { %v1165_v24 = vmul.f32 %v1974_v18, %v1157_v19 }
 0x71b   : > { %v2305_v26 = vpop.eup %2304 }
 0x71c   : > { %v1173_v28 = vadd.f32 %v1975_v20, %v1165_v24  ;;  %v1158_v29 = vmul.f32 %v2305_v26, %v1142_v22 }
 0x71e   : > { %v2757_v30 = vmul.f32 %v1173_v28, %v2754_v27  ;;  %v1166_v31 = vmul.f32 %v1974_v18, %v1158_v29 }
 0x720   : > { %v1174_v33 = vadd.f32 %v1975_v20, %v1166_v31  ;;  %v1180_v34 = vrot.slane %v2757_v30, 7 }
 0x722   : > { %v2763_v35 = vmul.f32 %v1174_v33, %v2759_v32  ;;  %v1186_v37 = vsel %vm1179_vm6, 0.0, %v1180_v34 }
 0x724   : > { %v1181_v36 = vrot.slane %v2763_v35, 7 }
 0x726   : > { %v1182_v38 = vsel %vm1179_vm6, %v1180_v34, %v1181_v36  ;;  %v1187_v39 = vsel %vm1179_vm6, %v1181_v36, 0.0 }
 0x727   : > { %v1188_v40 = vpack.c.bf16 %v1182_v38, %v1186_v37  ;;  %v1193_v41 = vpack.c.bf16 %v1187_v39, %v1187_v39 }
 0x729   : > { %v1208_v42 = vshll.u32 %v1193_v41, 16  ;;  %2129 = vmatmul.mubr.msk.bf16.vlgmr.msra.gmra.mrb[12].mxu1 %vm749_vm2, %v1188_v40  ;;  %v1203_v43 = vshll.u32 %v1188_v40, 16  ;;  %v1201_v44 = vshrl.u32 %v1188_v40, 16  ;;  %v1332_v51 = vrot.slane %v1193_v41, 1 }
 0x72a   : > { %2148 = vmatprep.mubr.msk.bf16.mxu1 %vm2407_vm1, %v2406_v3  ;;  %v1331_v52 = vrot.slane %v1188_v40, 1  ;;  %2141 = vmatpush3.bf16.msra.mxu1 %v2276_v56  ;;  %v2282_v40 = vld [vmem:[%s2627_s6 + $0x40] sm:$0xff]  }
 0x72b   : > { %v1205_v45 = vrot.slane %v1203_v43, 1  ;;  %v1210_v46 = vrot.slane %v1208_v42, 1  ;;  %2142 = vmatprep.subr.bf16.mxu1 %v2406_v3  ;;  %v2283_v42 = vld [vmem:[%s2627_s6 + $0x48] sm:$0xff]   ;;  %v2284_v43 = vld [vmem:[%s2627_s6 + $0x50] sm:$0xff]   ;;  %v2025_v56 = vld [vmem:[%s677_s4] ss:$0 sm:$0xff] }
 0x72c   : > { %v1333_v53 = vsel %vm1330_vm8, %v1331_v52, %v1332_v51 }
 0x72d   : > { %v1206_v47 = vor.u32 %v1205_v45, %v1201_v44  ;;  %v2285_v44 = vld [vmem:[%s2627_s6 + $0x58] sm:$0xff]  }
 0x72e   : > { %2143 = vmatpush3.bf16.msra.mxu1 %v2278_v5 }
 0x72f   : > { %v1211_v49 = vsel %vm1199_vm7, %v1206_v47, %v1210_v46  ;;  %2144 = vmatprep.subr.bf16.mxu1 %v2406_v3 }
 0x730   : > { %2121 = vmatmul.mubr.msk.bf16.vlgmr.msra.gmra.mrb[12].mxu0 %vm749_vm2, %v1211_v49 }
 0x731   : > { %2133 = vmatpush3.bf16.msra.mxu0 %v2272_v48  ;;  %2136 = vmatprep.mubr.msk.bf16.mxu0 %vm2407_vm1, %v2406_v3 }
 0x732   : > { %2134 = vmatprep.subr.bf16.mxu0 %v2406_v3  ;;  %2145 = vmatpush3.bf16.msra.mxu1 %v2280_v58 }
 0x733   : > { %2146 = vmatprep.subr.bf16.mxu1 %v2406_v3 }
 0x735   : > { %2135 = vmatpush3.bf16.msra.mxu0 %v2273_v50 }
 0x736   : > { %2152 = vmatprep.subr.bf16.mxu0 %v2406_v3  ;;  %2147 = vmatpush3.bf16.msra.mxu1 %v2281_v59 }
 0x737   : > { %2164 = vmatprep.subr.bf16.mxu1 %v2406_v3 }
 0x738   : > { %2137 = vmatmul.mubr.msk.bf16.vlgmr.msra.gmra.mrb[16].mxu0 %vm749_vm2, %v1333_v53 }
 0x739   : > { %2160 = vmatprep.mubr.msk.bf16.mxu0 %vm2407_vm1, %v2406_v3  ;;  %2153 = vmatpush3.bf16.msra.mxu0 %v2274_v54 }
 0x73a   : > { %2154 = vmatprep.subr.bf16.mxu0 %v2406_v3 }
 0x73d   : > { %2155 = vmatpush3.bf16.msra.mxu0 %v2275_v55 }
 0x73e   : > { %2156 = vmatprep.subr.bf16.mxu0 %v2406_v3 }
 0x741   : > { %2157 = vmatpush3.bf16.msra.mxu0 %v2277_v57 }
 0x742   : > { %2158 = vmatprep.subr.bf16.mxu0 %v2406_v3 }
 0x745   : > { %2159 = vmatpush3.bf16.msra.mxu0 %v2279_v6 }
 0x7fc   : > { %v1316_v60 = vpop.f32.mrb[12].mxu1 }
 0x7fd   : > { %v2130_v21 = vpop.f32.mrb[13].mxu1 }
 0x7fe   : > { %v1319_v23 = vpop.f32.mrb[14].mxu1 }
 0x7ff   : > { %v2131_v61 = vpop.f32.mrb[15].mxu1 }
 0x803   : > { %v1261_v62 = vpop.f32.mrb[12].mxu0 }
 0x804   : > { %v1317_v63 = vadd.f32 %v1316_v60, %v1261_v62  ;;  %v2122_v22 = vpop.f32.mrb[13].mxu0 }
 0x805   : > { %v1264_v25 = vpop.f32.mrb[14].mxu0 }
 0x806   : > { %v1320_v0 = vadd.f32 %v1319_v23, %v1264_v25  ;;  %v2123_v1 = vpop.f32.mrb[15].mxu0 }
 0x80b   : > { %v1383_v2 = vpop.f32.mrb[16].mxu0 }
 0x80c   : > { %v1390_v7 = vadd.f32 %v1383_v2, %v1317_v63  ;;  %v2138_v8 = vpop.f32.mrb[17].mxu0 }
 0x80d   : > { %v1386_v9 = vpop.f32.mrb[18].mxu0 }
 0x80e   : > { %v1399_v10 = vadd.f32 %v1993_v4, %v1390_v7  ;;  %v1391_v11 = vadd.f32 %v1386_v9, %v1320_v0  ;;  %v2139_v12 = vpop.f32.mrb[19].mxu0 }
 0x810   : > { %v1401_v13 = vmax.f32 %v1399_v10, 0.0  ;;  %v1400_v14 = vadd.f32 %v1993_v4, %v1391_v11 }
 0x812   : > { %v1405_v16 = vrot.slane %v1401_v13, 7  ;;  %v1402_v17 = vmax.f32 %v1400_v14, 0.0 }
 0x814   : > { %v1406_v15 = vrot.slane %v1402_v17, 7  ;;  %v1411_v18 = vsel %vm1179_vm6, 0.0, %v1405_v16 }
 0x816   : > { %v1407_v19 = vsel %vm1179_vm6, %v1405_v16, %v1406_v15  ;;  %v1412_v20 = vsel %vm1179_vm6, %v1406_v15, 0.0  ;;  %v2026_v16 = vld [vmem:[%s680_s0] ss:$0 sm:$0xff]  ;;  %s2990_s0 = sld [smem:[#allocation9_spill]] }
 0x817   : > { %v1413_v24 = vpack.c.bf16 %v1407_v19, %v1411_v18  ;;  %v1422_v26 = vpack.c.bf16 %v1412_v20, %v1412_v20  ;;  %v2027_v18 = vld [vmem:[%s683_s9] ss:$0 sm:$0xff] }
 0x819   : > { %v1440_v28 = vshll.u32 %v1422_v26, 16  ;;  %v1592_v29 = vrot.slane %v1422_v26, 1  ;;  %2161 = vmatmul.mubr.msk.bf16.vlgmr.msra.gmra.mrb[20].mxu0 %vm1468_vm9, %v1413_v24  ;;  %v1435_v31 = vshll.u32 %v1413_v24, 16  ;;  %v1591_v33 = vrot.slane %v1413_v24, 1 }
 0x81a   : > { %v1433_v34 = vshrl.u32 %v1413_v24, 16 }
 0x81b   : > { %v1437_v36 = vrot.slane %v1435_v31, 1  ;;  %v1593_v37 = vsel %vm1330_vm8, %v1591_v33, %v1592_v29  ;;  %v1442_v38 = vrot.slane %v1440_v28, 1 }
 0x81c   : > { %p2028_p1 = scmp.ne.s32.totalorder %s2990_s0, 1 }
 0x81d   : > { %v1438_v39 = vor.u32 %v1437_v36, %v1433_v34 }
 0x81f   : > { %v1443_v41 = vsel %vm1199_vm7, %v1438_v39, %v1442_v38 }
 0x820   : > { %2149 = vmatmul.mubr.msk.bf16.vlgmr.msra.gmra.mrb[16].mxu1 %vm1468_vm9, %v1443_v41 }
 0x821   : > { %2165 = vmatpush3.bf16.msra.mxu1 %v2282_v40  ;;  %2172 = vmatprep.mubr.msk.bf16.mxu1 %vm2407_vm1, %v2406_v3 }
 0x822   : > { %2166 = vmatprep.subr.bf16.mxu1 %v2406_v3 }
 0x825   : > { %2167 = vmatpush3.bf16.msra.mxu1 %v2283_v42 }
 0x826   : > { %2168 = vmatprep.subr.bf16.mxu1 %v2406_v3 }
 0x829   : > { %2169 = vmatpush3.bf16.msra.mxu1 %v2284_v43 }
 0x82a   : > { %2170 = vmatprep.subr.bf16.mxu1 %v2406_v3 }
 0x82d   : > { %2171 = vmatpush3.bf16.msra.mxu1 %v2285_v44 }
 0x830   : > { %2173 = vmatmul.mubr.msk.bf16.vlgmr.msra.gmra.mrb[20].mxu1 %vm1468_vm9, %v1593_v37 }
 0x8ec   : > { %v1573_v45 = vpop.f32.mrb[20].mxu0 }
 0x8ed   : > { %v2162_v46 = vpop.f32.mrb[21].mxu0 }
 0x8ee   : > { %v1576_v47 = vpop.f32.mrb[22].mxu0 }
 0x8ef   : > { %v2163_v48 = vpop.f32.mrb[23].mxu0 }
 0x8f3   : > { %v1506_v49 = vpop.f32.mrb[16].mxu1 }
 0x8f4   : > { %v1574_v50 = vadd.f32 %v1573_v45, %v1506_v49  ;;  %v2150_v51 = vpop.f32.mrb[17].mxu1 }
 0x8f5   : > { %v1509_v52 = vpop.f32.mrb[18].mxu1 }
 0x8f6   : > { %v1577_v53 = vadd.f32 %v1576_v47, %v1509_v52  ;;  %v2151_v54 = vpop.f32.mrb[19].mxu1 }
 0x903   : > { %v1655_v55 = vpop.f32.mrb[20].mxu1 }
 0x904   : > { %v1662_v3 = vadd.f32 %v1655_v55, %v1574_v50  ;;  %v2174_v57 = vpop.f32.mrb[21].mxu1 }
 0x905   : > { %v1658_v5 = vpop.f32.mrb[22].mxu1 }
 0x906   : > { %v1671_v6 = vadd.f32 %v2025_v56, %v1662_v3  ;;  %v1663_v58 = vadd.f32 %v1658_v5, %v1577_v53  ;;  %v2175_v59 = vpop.f32.mrb[23].mxu1 }
 0x908   : > { %v1672_v60 = vadd.f32 %v2025_v56, %v1663_v58  ;;  %v1673_v21 = vadd.f32 %v1671_v6, %v2757_v30 }
 0x90a   : > { %v1677_v23 = vsel %vm749_vm2, %v1673_v21, 0.0  ;;  %v1674_v61 = vadd.f32 %v1672_v60, %v2763_v35 }
 0x90b   : > { %1678 = vadd.xlane.f32.xlu1 %v1677_v23 }
 0x90c   : > { %v1680_v62 = vsel %vm749_vm2, %v1674_v61, 0.0 }
 0x90d   : > { %1681 = vadd.xlane.f32.xlu0 %v1680_v62 }
 0x998   : > { %v1679_v63 = vpop.xlane.xlu1 %1678 }
 0x999   : > { %v1683_v22 = vmul.f32 0.03125, %v1679_v63 }
 0x99a   : > { %v1682_v25 = vpop.xlane.xlu0 %1681 }
 0x99b   : > { %v1685_v0 = vsub.f32 %v1673_v21, %v1683_v22  ;;  %v1684_v1 = vmul.f32 0.03125, %v1682_v25 }
 0x99d   : > { %v1686_v2 = vsub.f32 %v1674_v61, %v1684_v1  ;;  %v1687_v4 = vmul.f32 %v1685_v0, %v1685_v0 }
 0x99f   : > { %v1689_v7 = vsel %vm749_vm2, %v1687_v4, 0.0  ;;  %v1688_v8 = vmul.f32 %v1686_v2, %v1686_v2 }
 0x9a0   : > { %1690 = vadd.xlane.f32.xlu1 %v1689_v7 }
 0x9a1   : > { %v1692_v30 = vsel %vm749_vm2, %v1688_v8, 0.0 }
 0x9a2   : > { %1693 = vadd.xlane.f32.xlu0 %v1692_v30 }
 0xa2d   : > { %v1691_v35 = vpop.xlane.xlu1 %1690 }
 0xa2e   : > { %v1695_v9 = vmul.f32 0.03125, %v1691_v35 }
 0xa2f   : > { %v1694_v10 = vpop.xlane.xlu0 %1693 }
 0xa30   : > { %v1697_v11 = vadd.f32 1e-05, %v1695_v9  ;;  %v1696_v12 = vmul.f32 0.03125, %v1694_v10 }
 0xa32   : > { %2306 = vrsqrt.f32 %v1697_v11  ;;  %v1698_v13 = vadd.f32 1e-05, %v1696_v12 }
 0xa34   : > { %2308 = vrsqrt.f32 %v1698_v13 }
 0xa3c   : > { %v2307_v14 = vpop.eup %2306 }
 0xa3d   : > { %v1701_v17 = vmul.f32 %v2307_v14, %v1685_v0 }
 0xa3e   : > { %v2309_v15 = vpop.eup %2308 }
 0xa3f   : > { %v1709_v19 = vmul.f32 %v2026_v16, %v1701_v17  ;;  %v1702_v20 = vmul.f32 %v2309_v15, %v1686_v2 }
 0xa41   : > { %v1717_v24 = vadd.f32 %v2027_v18, %v1709_v19  ;;  %v1710_v26 = vmul.f32 %v2026_v16, %v1702_v20  ;;  %1726 = sbr.rel (%p2028_p1) target bundleno = 2632 (0xa48), region = 84 }
 0xa43   : > { %v1719_v28 = vmul.f32 %v1717_v24, %v2754_v27  ;;  %v1718_v29 = vadd.f32 %v2027_v18, %v1710_v26 }
 0xa45   : > { %1721 = vst.msk [vmem:[#allocation2] sm:$0xff] %vm749_vm2, %v1719_v28  ;;  %v1720_v31 = vmul.f32 %v1718_v29, %v2759_v32  ;;  %1727 = vst.msk [vmem:[%s2633_s13] sm:$0xff] (!%p2028_p1), %vm749_vm2, %v1719_v28 }
 0xa47   : > { %1722 = vst.msk [vmem:[#allocation2 + $0x8] sm:$0xff] %vm749_vm2, %v1720_v31  ;;  %1728 = vst.msk [vmem:[%s2633_s13 + $0x8] sm:$0xff] (!%p2028_p1), %vm749_vm2, %v1720_v31 }
 0xa48 PF: > { %s2991_s9 = sld [smem:[#allocation10_spill]]  ;;  %s2992_s24 = sld [smem:[#allocation7_spill]] }
 0xa49   : > { %s2994_s17 = sld [smem:[#allocation28_spill]]  ;;  %s1743_s7 = sshll.u32 %s2633_s13, 4  ;;  %s2858_s7 = int_to_ptr.vmem [resolvable:$true] %s1743_s7 }
 0xa4a   : > { %s2310_s15 = scalar_lea.vmem %s2858_s7, 256  ;;  %s2414_s23 = smov [#allocation3]  }
 0xa4b   : > { %p2311_p2 = scmp.ne.s32.totalorder %s2858_s7, %s2310_s15  ;;  %s2314_s25 = sshll.u32 %s2414_s23, 4  ;;  %s2315_s25 = int_to_ptr.vmem [resolvable:$false] %s2314_s25 }
 0xa4c   : > { %s2316_s26 = scalar_lea.vmem %s2315_s25, 512  ;;  %p2317_p6 = scmp.lt.s32.totalorder %s2858_s7, %s2315_s25 }
 0xa4d   : > { %p2312_p4 = pnand %p2311_p2, %p2541_p3  ;;  %p2318_p7 = scmp.lt.s32.totalorder %s2316_s26, %s2310_s15 }
 0xa4e   : > { %s2037_s27 = sshll.u32 %s2991_s9, 8  ;;  %s2996_s16 = sand.u32 1, %s2992_s24  }
 0xa4f   : > { %s2995_s2 = smov %s2994_s17  ;;  %s2855_s29 = scalar_lea.hbm %s2994_s17, %s2037_s27 }
 0xa50   : > { %s2862_s19 = scalar_lea.sflag [#allocation4], %s2996_s16  ;;  %p2313_p5 = pneg %p2312_p4 }
 0xa51   : > { %p2319_p8 = por %p2318_p7, %p2317_p6 }
 0xa53   : > { %p2320_p10 = pnand %p2319_p8, %p2313_p5 }
 0xa55   : > { %2323 = shalt.err (!%p2320_p10)
}
 0xa56   : > { %s2324_s13 = scalar_lea.hbm %s2855_s29, 256  ;;  %s2328_s4 = scalar_lea.hbm %s2995_s2, 512 }
 0xa57   : > { %p2325_p11 = scmp.ne.s32.totalorder %s2855_s29, %s2324_s13  ;;  %p2329_p0 = scmp.lt.u32.totalorder %s2855_s29, %s2995_s2 }
 0xa58   : > { %p2330_p1 = scmp.lt.u32.totalorder %s2328_s4, %s2324_s13  ;;  %p2332_p4 = scmp.lt.u32.totalorder %s2324_s13, %s2855_s29 }
 0xa59   : > { %p2326_p12 = pnand %p2325_p11, %p2541_p3 }
 0xa5a   : > { %p2331_p2 = por %p2330_p1, %p2329_p0 }
 0xa5b   : > { %p2327_p13 = pneg %p2326_p12 }
 0xa5c   : > { %p2333_p5 = por %p2332_p4, %p2331_p2 }
 0xa5e   : > { %p2334_p6 = pnand %p2333_p5, %p2327_p13 }
 0xa60   : > { %2337 = shalt.err (!%p2334_p6)
}
 0xa61   : > { %s2415_s22 = smov 128   ;;  %s2416_s28 = smov 8  }
 0xa62   : > { %2178 = dma.vmem_to_hbm [thread:$0]  (%p2541_p3), %s2858_s7, 256, %s2855_s29, %s2862_s19, %s2415_s22, %s2415_s22, %s2416_s28  }
 0xa63 PF: > { %s2997_s12 = sld [smem:[#allocation13_spill]]  ;;  %s2998_s0 = sld [smem:[#allocation6_spill]] }
 0xa69   : > { %p2184_p7 = scmp.ge.s32.totalorder %s2997_s12, 2  ;;  %s1758_s24 = sand.u32 1, %s2998_s0  }
 0xa6a   : > { %s1759_s27 = scalar_lea.sflag [#allocation4], %s1758_s24 }
 0xa6b   : > { %p2181_p8 = pnand %p2184_p7, %p2551_p9 }
 0xa6d   : > { %2371 = dma.done.wait (!%p2181_p8), %s1759_s27, 256  }
 0xa6e   : > { %2373 = vsyncadd (!%p2181_p8), %s1759_s27, 4294967040  ;;  %s27_s20 = sadd.s32 1, %s2997_s12   ;;  %s3000_s29 = sld [smem:[#allocation7_spill]] }
 0xa6f   : > { %p24_p10 = scmp.ge.s32.totalorder %s27_s20, 6   ;;  %s3001_s30 = sld [smem:[#allocation8_spill]] }
 0xa70   : > { %s3002_s15 = sld [smem:[#allocation18_spill]]  ;;  %s3003_s16 = sld [smem:[#allocation11_spill]] }
 0xa71   : > { %s3004_s17 = sld [smem:[#allocation12_spill]]  ;;  %s3005_s18 = sld [smem:[#allocation14_spill]] }
 0xa72   : > { %s3006_s19 = sld [smem:[#allocation16_spill]]  ;;  %26 = sbr.rel (!%p24_p10) target bundleno = 16 (0x10), region = 162 }
 0xa79   :  { %1764 = vsyncpa [#allocation4], 1 }
 0xa7a   :  { %1766 = vsyncpa [#allocation4 + $0x1], 1 }

</bundles_post_ra>
